<compile_context>
chip_gen: v5e
topology: v5e:2x2
jax: 0.10.0
libtpu: 0.0.40
codegen_flags: <defaults>
</compile_context>

<pallas_src>
import functools

import jax
import jax.numpy as jnp
from jax.experimental import pallas as pl
from jax.experimental.pallas import tpu as pltpu

EPS = 1e-5
HP = 128  # padded hidden / output lane width (one full vreg lane group)


# ----------------------------------------------------------------------------
# Fused kernel (one grid step == one module instance):
#   BN2d + ReLU + global avg pool + linear_h + cls refinement + BN1d +
#   fused (linear, score) heads, all VMEM-resident.
# ----------------------------------------------------------------------------
def fused_kernel(x_ref, xclf_ref, bn2_ref, wh_ref, wbw_ref, pvec_ref,
                 wheads_ref, out_ref, feat_ref, *, cls, hidden, num_classes):
    n, c_block, hw = x_ref.shape
    d = feat_ref.shape[1]
    f32 = jnp.float32

    # ---- BatchNorm2d (batch stats, single pass) + ReLU + global avg pool ----
    # sum / sum-of-squares lane (XLU) reductions in one traversal of x, then
    # normalize+affine+ReLU+pool fused as sum_HW(relu(x*a + b)) / HW.
    x = x_ref[...]                                            # (N, C, HW) f32
    inv_nhw = 1.0 / (n * hw)
    s1 = jnp.sum(x, axis=2, keepdims=True)                    # (N, C, 1)
    s2 = jnp.sum(x * x, axis=2, keepdims=True)                # (N, C, 1)
    mean = jnp.sum(s1, axis=0, keepdims=True) * inv_nhw       # (1, C, 1)
    ex2 = jnp.sum(s2, axis=0, keepdims=True) * inv_nhw        # (1, C, 1)
    var = jnp.maximum(ex2 - mean * mean, 0.0)                 # biased variance
    gamma = bn2_ref[0:1, :, :]                                # (1, C, 1)
    beta = bn2_ref[1:2, :, :]                                 # (1, C, 1)
    a = gamma * jax.lax.rsqrt(var + EPS)
    b = beta - mean * a
    pooled = jnp.sum(jnp.maximum(x * a + b, 0.0), axis=2) * (1.0 / hw)  # (N, C)

    # ---- feat = concat([pooled, x_clf], dim=1) assembled in VMEM scratch ----
    feat_ref[:, :c_block] = pooled
    feat_ref[:, c_block:] = xclf_ref[...]
    feat = feat_ref[...]                                      # (N, D)

    # ---- linear_h (output dim zero-padded to HP lanes; pads stay exactly 0) -
    wh = wh_ref[...].astype(f32)                              # (D, HP) bf16 -> f32
    bh = pvec_ref[0:1, :]                                     # (1, HP)
    rep = jnp.dot(feat, wh, preferred_element_type=f32) + bh  # (N, HP)

    if cls != 0:
        wbw = wbw_ref[...].astype(f32)                        # (HP, D) (pad rows = 0)
        bbw = pvec_ref[1:2, :d]                               # (1, D)
        b0 = jnp.maximum(pvec_ref[2:3, :] + 1.0, 0.0)         # (1, HP); pads -> 1.0
        for _ in range(cls):                                  # static unroll, cls <= 4
            back = jnp.dot(rep, wbw, preferred_element_type=f32) + bbw
            t = jnp.maximum(feat - back, 0.0)
            rep = (jnp.dot(t, wh, preferred_element_type=f32) + bh) * b0 + rep

    # ---- BatchNorm1d (batch statistics); padded lanes remain exactly 0 ------
    mean1 = jnp.sum(rep, axis=0, keepdims=True) * (1.0 / n)   # (1, HP)
    c1 = rep - mean1
    var1 = jnp.sum(c1 * c1, axis=0, keepdims=True) * (1.0 / n)
    h = c1 * jax.lax.rsqrt(var1 + EPS) * pvec_ref[3:4, :] + pvec_ref[4:5, :]

    # ---- fused heads: one 128-wide matmul.  Non-zero columns of wheads sit in
    #      lanes [hidden, hidden+num_classes]; lanes [0, hidden) of z are 0, so
    #      h + z packs [h | logits | score_pre | 0] exactly. ---------------------
    hr = jnp.maximum(h, 0.0)
    z = jnp.dot(hr, wheads_ref[...].astype(f32), preferred_element_type=f32) \
        + pvec_ref[5:6, :]
    slab = h + z                                              # (N, HP) lane-dense

    score_lane = hidden + num_classes
    lane = jax.lax.broadcasted_iota(jnp.int32, slab.shape, 1)
    out_ref[...] = jnp.where(lane == score_lane, jax.nn.sigmoid(slab), slab)


# ----------------------------------------------------------------------------
# One-time parameter packing (off the hot path).  Linear weights stored (in, out).
# Weight slabs default to bf16 storage (upcast in-kernel); pass
# weight_dtype=jnp.float32 for exact f32 storage.
# ----------------------------------------------------------------------------
def pack_params(p, *, c_block, c_clf, hidden, num_classes, hp=HP,
                weight_dtype=jnp.bfloat16):
    d = c_block + c_clf
    assert max(d, hidden + num_classes + 1) <= hp, "lane-packing requires <= 128"
    f32 = jnp.float32

    # BatchNorm2d affine, channel on sublane axis to match x's (N, C, HW) layout.
    bn2 = jnp.stack([jnp.reshape(p["bn_gamma"], (c_block, 1)),
                     jnp.reshape(p["bn_beta"], (c_block, 1))], axis=0).astype(f32)

    # linear_h weight, output dim zero-padded to hp lanes.
    wh = jnp.zeros((d, hp), f32).at[:, :hidden].set(p["wh"].astype(f32))

    # linear_bw weight, input dim zero-padded to hp (rows >= hidden are 0).
    wbw = jnp.zeros((hp, d), f32)
    if "wbw" in p:
        wbw = wbw.at[:hidden, :].set(p["wbw"].astype(f32))

    # Fused head weight: cols [hidden, hidden+num_classes) = linear, col
    # hidden+num_classes = score; everything else 0.
    wheads = jnp.zeros((hp, hp), f32)
    wheads = wheads.at[:hidden, hidden:hidden + num_classes].set(p["wout"].astype(f32))
    wheads = wheads.at[:hidden, hidden + num_classes].set(
        jnp.reshape(p["ws"], (-1,)).astype(f32))

    # All small (1, .) vectors packed into one lane-dense (8, hp) f32 slab.
    pvec = jnp.zeros((8, hp), f32)
    pvec = pvec.at[0, :hidden].set(jnp.reshape(p["bh"], (-1,)))          # bh
    if "bbw" in p:
        pvec = pvec.at[1, :d].set(jnp.reshape(p["bbw"], (-1,)))          # bbw
    if "b0" in p:
        pvec = pvec.at[2, :hidden].set(jnp.reshape(p["b0"], (-1,)))      # b0
    pvec = pvec.at[3, :hidden].set(jnp.reshape(p["bn1_gamma"], (-1,)))   # BN1d gamma
    pvec = pvec.at[4, :hidden].set(jnp.reshape(p["bn1_beta"], (-1,)))    # BN1d beta
    pvec = pvec.at[5, hidden:hidden + num_classes].set(jnp.reshape(p["bout"], (-1,)))
    pvec = pvec.at[5, hidden + num_classes].set(jnp.reshape(p["bs"], ()))

    packed = {"bn2": bn2,
              "wh": wh.astype(weight_dtype),
              "wbw": wbw.astype(weight_dtype),
              "pvec": pvec,
              "wheads": wheads.astype(weight_dtype)}
    _assert_pack_invariants(packed, d=d, hidden=hidden, num_classes=num_classes, hp=hp)
    return packed


def _assert_pack_invariants(packed, *, d, hidden, num_classes, hp=HP):
    """The zero-pad lanes below are load-bearing for the packed output.

    Host-side, one-time check (do not call under jit)."""
    sc = hidden + num_classes
    assert bool(jnp.all(packed["wh"][:, hidden:] == 0))        # wh pad cols
    assert bool(jnp.all(packed["wbw"][hidden:, :] == 0))       # wbw pad rows
    wheads = packed["wheads"]
    assert bool(jnp.all(wheads[hidden:, :] == 0))              # wheads pad rows
    assert bool(jnp.all(wheads[:, :hidden] == 0))              # wheads low cols
    assert bool(jnp.all(wheads[:, sc + 1:] == 0))              # wheads high cols
    pvec = packed["pvec"]
    assert bool(jnp.all(pvec[0, hidden:] == 0))                # bh pads
    assert bool(jnp.all(pvec[1, d:] == 0))                     # bbw pads
    assert bool(jnp.all(pvec[2, hidden:] == 0))                # b0 pads -> relu(0+1)=1
    assert bool(jnp.all(pvec[3, hidden:] == 0))                # BN1d gamma pads
    assert bool(jnp.all(pvec[4, hidden:] == 0))                # BN1d beta pads
    assert bool(jnp.all(pvec[5, :hidden] == 0))                # head-bias low lanes
    assert bool(jnp.all(pvec[5, sc + 1:] == 0))                # head-bias high lanes
    assert bool(jnp.all(pvec[6:, :] == 0))                     # unused rows


def stack_packed(packed_list):
    """Stack per-instance packed params along a leading instance axis."""
    return jax.tree_util.tree_map(lambda *xs: jnp.stack(xs, axis=0), *packed_list)


def _nbytes(a):
    return a.size * jnp.dtype(a.dtype).itemsize


# ----------------------------------------------------------------------------
# Wrapper: one pallas_call over L independent module instances (grid=(L,)).
# Inputs carry a leading instance axis L (use L=1 for a single module).
# ----------------------------------------------------------------------------
def classifier_module_middle(x_blocks, x_clfs, packed, *, cls, hidden, num_classes):
    L, N, C, H, W = x_blocks.shape
    assert H == W, "avg_pool2d(x, x.size(-1)) is a global pool only when H == W"
    c_clf = x_clfs.shape[-1]
    d = C + c_clf
    hw = H * W

    # NCHW -> (N, C, H*W): metadata-only reshape, no transpose / HBM rewrite.
    x = x_blocks.reshape(L, N, C, hw).astype(jnp.float32)
    xclf = x_clfs.astype(jnp.float32)

    # Advisory cost estimate so XLA schedules the custom call sensibly.
    matmul_flops = L * (2 * N * d * HP * (1 + 2 * cls) + 2 * N * HP * HP)
    ew_flops = L * (8 * N * C * hw + 16 * N * HP)
    bytes_accessed = (_nbytes(x) + _nbytes(xclf) + _nbytes(packed["bn2"])
                      + _nbytes(packed["wh"]) + _nbytes(packed["wbw"])
                      + _nbytes(packed["pvec"]) + _nbytes(packed["wheads"])
                      + L * N * HP * 4)
    cost = pl.CostEstimate(flops=int(matmul_flops + ew_flops),
                           transcendentals=int(L * (N * HP + C + HP)),
                           bytes_accessed=int(bytes_accessed))

    out = pl.pallas_call(
        functools.partial(fused_kernel, cls=cls, hidden=hidden,
                          num_classes=num_classes),
        out_shape=jax.ShapeDtypeStruct((L, N, HP), jnp.float32),
        grid=(L,),
        in_specs=[
            pl.BlockSpec((None, N, C, hw), lambda l: (l, 0, 0, 0)),   # x
            pl.BlockSpec((None, N, c_clf), lambda l: (l, 0, 0)),      # x_clf
            pl.BlockSpec((None, 2, C, 1), lambda l: (l, 0, 0, 0)),    # bn2
            pl.BlockSpec((None, d, HP), lambda l: (l, 0, 0)),         # wh   (bf16)
            pl.BlockSpec((None, HP, d), lambda l: (l, 0, 0)),         # wbw  (bf16)
            pl.BlockSpec((None, 8, HP), lambda l: (l, 0, 0)),         # pvec (f32)
            pl.BlockSpec((None, HP, HP), lambda l: (l, 0, 0)),        # wheads (bf16)
        ],
        out_specs=pl.BlockSpec((None, N, HP), lambda l: (l, 0, 0)),
        scratch_shapes=[pltpu.VMEM((N, d), jnp.float32)],             # feat scratch
        compiler_params=pltpu.CompilerParams(
            dimension_semantics=("parallel",),           # shard instances over TCs
            vmem_limit_bytes=32 * 1024 * 1024),
        cost_estimate=cost,
    )(x, xclf, packed["bn2"], packed["wh"], packed["wbw"],
      packed["pvec"], packed["wheads"])

    h = out[:, :, :hidden]
    logits = out[:, :, hidden:hidden + num_classes]
    score = out[:, :, hidden + num_classes:hidden + num_classes + 1]
    return logits, h, score


# ----------------------------------------------------------------------------
# Pure-JAX reference (mirrors the PyTorch forward) for validation
# ----------------------------------------------------------------------------
def reference_forward(x_block, x_clf, p, *, cls):
    x = x_block.astype(jnp.float32)                     # (N, C, H, W)
    mean = jnp.mean(x, axis=(0, 2, 3), keepdims=True)
    var = jnp.mean((x - mean) ** 2, axis=(0, 2, 3), keepdims=True)
    y = (x - mean) * jax.lax.rsqrt(var + EPS)
    y = y * p["bn_gamma"].reshape(1, -1, 1, 1) + p["bn_beta"].reshape(1, -1, 1, 1)
    y = jnp.maximum(y, 0.0)
    pooled = jnp.mean(y, axis=(2, 3))                   # (N, C)

    feat = jnp.concatenate([pooled, x_clf], axis=1)
    rep = feat @ p["wh"] + p["bh"]
    if cls != 0:
        b0 = jnp.maximum(p["b0"] + 1.0, 0.0)
        for _ in range(cls):
            back = rep @ p["wbw"] + p["bbw"]
            t = jnp.maximum(feat - back, 0.0)
            rep = (t @ p["wh"] + p["bh"]) * b0 + rep

    m = jnp.mean(rep, axis=0, keepdims=True)
    v = jnp.mean((rep - m) ** 2, axis=0, keepdims=True)
    h = (rep - m) * jax.lax.rsqrt(v + EPS) * p["bn1_gamma"] + p["bn1_beta"]
    hr = jnp.maximum(h, 0.0)
    logits = hr @ p["wout"] + p["bout"]
    score = jax.nn.sigmoid(hr @ p["ws"] + p["bs"])
    return logits, h, score


def as_stored_precision(p, weight_dtype=jnp.bfloat16):
    """Round the matmul weights the same way the packed slabs store them."""
    q = dict(p)
    for k in ("wh", "wbw", "wout", "ws"):
        if k in p:
            q[k] = p[k].astype(weight_dtype).astype(jnp.float32)
    return q


def make_params(key, *, c_block, c_clf, hidden, num_classes):
    d = c_block + c_clf
    ks = jax.random.split(key, 12)
    f32 = jnp.float32
    return {
        "bn_gamma": 1.0 + 0.1 * jax.random.normal(ks[0], (1, c_block), f32),
        "bn_beta": 0.1 * jax.random.normal(ks[1], (1, c_block), f32),
        "wh": 0.1 * jax.random.normal(ks[2], (d, hidden), f32),
        "bh": 0.1 * jax.random.normal(ks[3], (1, hidden), f32),
        "wbw": 0.1 * jax.random.normal(ks[4], (hidden, d), f32),
        "bbw": 0.1 * jax.random.normal(ks[5], (1, d), f32),
        "b0": jnp.zeros((1, hidden), f32),   # nn.Parameter(torch.zeros(1, hidden))
        "bn1_gamma": 1.0 + 0.1 * jax.random.normal(ks[6], (1, hidden), f32),
        "bn1_beta": 0.1 * jax.random.normal(ks[7], (1, hidden), f32),
        "wout": 0.1 * jax.random.normal(ks[8], (hidden, num_classes), f32),
        "bout": 0.1 * jax.random.normal(ks[9], (1, num_classes), f32),
        "ws": 0.1 * jax.random.normal(ks[10], (hidden, 1), f32),
        "bs": 0.1 * jax.random.normal(ks[11], (1, 1), f32),
    }


# ----------------------------------------------------------------------------
if __name__ == "__main__":
    # L independent ClassifierModuleMiddle instances (one per PCN block) fused
    # into ONE pallas_call; small shapes consistent with the module.
    L = 3
    N, C_BLOCK, H, W = 8, 16, 8, 8
    C_CLF = 16
    HIDDEN = 32
    NUM_CLASSES = 10
    CLS = 2

    key = jax.random.PRNGKey(0)
    kx, kc, kp = jax.random.split(key, 3)

    x_blocks = jax.random.normal(kx, (L, N, C_BLOCK, H, W), jnp.float32)
    x_clfs = jax.random.normal(kc, (L, N, C_CLF), jnp.float32)

    params_list = [make_params(k, c_block=C_BLOCK, c_clf=C_CLF,
                               hidden=HIDDEN, num_classes=NUM_CLASSES)
                   for k in jax.random.split(kp, L)]

    packed = stack_packed([pack_params(p, c_block=C_BLOCK, c_clf=C_CLF,
                                       hidden=HIDDEN, num_classes=NUM_CLASSES)
                           for p in params_list])
    packed = jax.block_until_ready(packed)   # one-time packing, off the hot path

    logits, h, score = classifier_module_middle(
        x_blocks, x_clfs, packed, cls=CLS, hidden=HIDDEN, num_classes=NUM_CLASSES)
    jax.block_until_ready((logits, h, score))

    assert logits.shape == (L, N, NUM_CLASSES)
    assert h.shape == (L, N, HIDDEN)
    assert score.shape == (L, N, 1)

    # Validate every instance against the pure-JAX reference evaluated with the
    # same (bf16-stored) weight values the kernel uses.
    for l in range(L):
        p_ref = as_stored_precision(params_list[l])
        ref_logits, ref_h, ref_score = reference_forward(
            x_blocks[l], x_clfs[l], p_ref, cls=CLS)
        assert jnp.allclose(logits[l], ref_logits, rtol=1e-4, atol=1e-4)
        assert jnp.allclose(h[l], ref_h, rtol=1e-4, atol=1e-4)
        assert jnp.allclose(score[l], ref_score, rtol=1e-4, atol=1e-4)

    print("KERNEL_OK")
</pallas_src>

<mosaic_0001>
module attributes {stable_mosaic.version = 11 : i64} {
  func.func @fused_kernel(%arg0: i32, %arg1: memref<1x8x16x64xf32, #tpu.memory_space<vmem>>, %arg2: memref<1x8x16xf32, #tpu.memory_space<vmem>>, %arg3: memref<1x2x16x1xf32, #tpu.memory_space<vmem>>, %arg4: memref<1x32x128xbf16, #tpu.memory_space<vmem>>, %arg5: memref<1x128x32xbf16, #tpu.memory_space<vmem>>, %arg6: memref<1x8x128xf32, #tpu.memory_space<vmem>>, %arg7: memref<1x128x128xbf16, #tpu.memory_space<vmem>>, %arg8: memref<1x8x128xf32, #tpu.memory_space<vmem>>, %arg9: memref<8x32xf32, #tpu.memory_space<vmem>>) attributes {dimension_semantics = [#tpu.dimension_semantics<parallel>], iteration_bounds = array<i64: 3>, scalar_prefetch = 0 : i64, scratch_operands = 1 : i64, tpu.core_type = #tpu.core_type<tc>, window_params = [{transform_indices = @transform_0, window_bounds = array<i64: 1, 8, 16, 64>}, {transform_indices = @transform_1, window_bounds = array<i64: 1, 8, 16>}, {transform_indices = @transform_2, window_bounds = array<i64: 1, 2, 16, 1>}, {transform_indices = @transform_3, window_bounds = array<i64: 1, 32, 128>}, {transform_indices = @transform_4, window_bounds = array<i64: 1, 128, 32>}, {transform_indices = @transform_5, window_bounds = array<i64: 1, 8, 128>}, {transform_indices = @transform_6, window_bounds = array<i64: 1, 128, 128>}, {transform_indices = @transform_7, window_bounds = array<i64: 1, 8, 128>}]} {
    %c0 = arith.constant 0 : index
    %c0_0 = arith.constant 0 : index
    %c0_1 = arith.constant 0 : index
    %c0_2 = arith.constant 0 : index
    %0 = vector.load %arg1[%c0, %c0_0, %c0_1, %c0_2] : memref<1x8x16x64xf32, #tpu.memory_space<vmem>>, vector<1x8x16x64xf32>
    %1 = vector.shape_cast %0 : vector<1x8x16x64xf32> to vector<8x16x64xf32>
    %cst = arith.constant dense<0.000000e+00> : vector<8x16xf32>
    %2 = vector.multi_reduction <add>, %1, %cst [2] : vector<8x16x64xf32> to vector<8x16xf32>
    %3 = vector.shape_cast %2 : vector<8x16xf32> to vector<8x16x1xf32>
    %4 = arith.mulf %1, %1 : vector<8x16x64xf32>
    %cst_3 = arith.constant dense<0.000000e+00> : vector<8x16xf32>
    %5 = vector.multi_reduction <add>, %4, %cst_3 [2] : vector<8x16x64xf32> to vector<8x16xf32>
    %6 = vector.shape_cast %5 : vector<8x16xf32> to vector<8x16x1xf32>
    %cst_4 = arith.constant dense<0.000000e+00> : vector<16x1xf32>
    %7 = vector.multi_reduction <add>, %3, %cst_4 [0] : vector<8x16x1xf32> to vector<16x1xf32>
    %8 = vector.shape_cast %7 : vector<16x1xf32> to vector<1x16x1xf32>
    %cst_5 = arith.constant 0.001953125 : f32
    %9 = vector.broadcast %cst_5 : f32 to vector<1x16x1xf32>
    %10 = arith.mulf %8, %9 : vector<1x16x1xf32>
    %cst_6 = arith.constant dense<0.000000e+00> : vector<16x1xf32>
    %11 = vector.multi_reduction <add>, %6, %cst_6 [0] : vector<8x16x1xf32> to vector<16x1xf32>
    %12 = vector.shape_cast %11 : vector<16x1xf32> to vector<1x16x1xf32>
    %cst_7 = arith.constant 0.001953125 : f32
    %13 = vector.broadcast %cst_7 : f32 to vector<1x16x1xf32>
    %14 = arith.mulf %12, %13 : vector<1x16x1xf32>
    %15 = arith.mulf %10, %10 : vector<1x16x1xf32>
    %16 = arith.subf %14, %15 : vector<1x16x1xf32>
    %cst_8 = arith.constant 0.000000e+00 : f32
    %17 = vector.broadcast %cst_8 : f32 to vector<1x16x1xf32>
    %18 = arith.maximumf %16, %17 : vector<1x16x1xf32>
    %c0_9 = arith.constant 0 : index
    %c0_10 = arith.constant 0 : index
    %c0_11 = arith.constant 0 : index
    %c0_12 = arith.constant 0 : index
    %19 = vector.load %arg3[%c0_9, %c0_10, %c0_11, %c0_12] : memref<1x2x16x1xf32, #tpu.memory_space<vmem>>, vector<1x1x16x1xf32>
    %20 = vector.shape_cast %19 : vector<1x1x16x1xf32> to vector<1x16x1xf32>
    %c0_13 = arith.constant 0 : index
    %c1 = arith.constant 1 : index
    %c0_14 = arith.constant 0 : index
    %c0_15 = arith.constant 0 : index
    %21 = vector.load %arg3[%c0_13, %c1, %c0_14, %c0_15] : memref<1x2x16x1xf32, #tpu.memory_space<vmem>>, vector<1x1x16x1xf32>
    %22 = vector.shape_cast %21 : vector<1x1x16x1xf32> to vector<1x16x1xf32>
    %cst_16 = arith.constant 9.99999974E-6 : f32
    %23 = vector.broadcast %cst_16 : f32 to vector<1x16x1xf32>
    %24 = arith.addf %18, %23 : vector<1x16x1xf32>
    %25 = math.rsqrt %24 : vector<1x16x1xf32>
    %26 = arith.mulf %20, %25 : vector<1x16x1xf32>
    %27 = arith.mulf %10, %26 : vector<1x16x1xf32>
    %28 = arith.subf %22, %27 : vector<1x16x1xf32>
    %29 = vector.broadcast %26 : vector<1x16x1xf32> to vector<8x16x64xf32>
    %30 = arith.mulf %1, %29 : vector<8x16x64xf32>
    %31 = vector.broadcast %28 : vector<1x16x1xf32> to vector<8x16x64xf32>
    %32 = arith.addf %30, %31 : vector<8x16x64xf32>
    %cst_17 = arith.constant 0.000000e+00 : f32
    %33 = vector.broadcast %cst_17 : f32 to vector<8x16x64xf32>
    %34 = arith.maximumf %32, %33 : vector<8x16x64xf32>
    %cst_18 = arith.constant dense<0.000000e+00> : vector<8x16xf32>
    %35 = vector.multi_reduction <add>, %34, %cst_18 [2] : vector<8x16x64xf32> to vector<8x16xf32>
    %cst_19 = arith.constant 1.562500e-02 : f32
    %36 = vector.broadcast %cst_19 : f32 to vector<8x16xf32>
    %37 = arith.mulf %35, %36 : vector<8x16xf32>
    %c0_20 = arith.constant 0 : index
    %c0_21 = arith.constant 0 : index
    %38 = vector.load %arg9[%c0_20, %c0_21] : memref<8x32xf32, #tpu.memory_space<vmem>>, vector<8x16xf32>
    tpu.vector_store %arg9[%c0_20, %c0_21], %37 {strides = array<i32>} : memref<8x32xf32, #tpu.memory_space<vmem>>, vector<8x16xf32>,
    %c0_22 = arith.constant 0 : index
    %c0_23 = arith.constant 0 : index
    %c0_24 = arith.constant 0 : index
    %39 = vector.load %arg2[%c0_22, %c0_23, %c0_24] : memref<1x8x16xf32, #tpu.memory_space<vmem>>, vector<1x8x16xf32>
    %40 = vector.shape_cast %39 : vector<1x8x16xf32> to vector<8x16xf32>
    %c0_25 = arith.constant 0 : index
    %c16 = arith.constant 16 : index
    %41 = vector.load %arg9[%c0_25, %c16] : memref<8x32xf32, #tpu.memory_space<vmem>>, vector<8x16xf32>
    tpu.vector_store %arg9[%c0_25, %c16], %40 {strides = array<i32>} : memref<8x32xf32, #tpu.memory_space<vmem>>, vector<8x16xf32>,
    %c0_26 = arith.constant 0 : index
    %c0_27 = arith.constant 0 : index
    %42 = vector.load %arg9[%c0_26, %c0_27] : memref<8x32xf32, #tpu.memory_space<vmem>>, vector<8x32xf32>
    %c0_28 = arith.constant 0 : index
    %c0_29 = arith.constant 0 : index
    %c0_30 = arith.constant 0 : index
    %43 = vector.load %arg4[%c0_28, %c0_29, %c0_30] : memref<1x32x128xbf16, #tpu.memory_space<vmem>>, vector<1x32x128xbf16>
    %44 = vector.shape_cast %43 : vector<1x32x128xbf16> to vector<32x128xbf16>
    %45 = arith.extf %44 : vector<32x128xbf16> to vector<32x128xf32>
    %c0_31 = arith.constant 0 : index
    %c0_32 = arith.constant 0 : index
    %c0_33 = arith.constant 0 : index
    %46 = vector.load %arg6[%c0_31, %c0_32, %c0_33] : memref<1x8x128xf32, #tpu.memory_space<vmem>>, vector<1x1x128xf32>
    %47 = vector.shape_cast %46 : vector<1x1x128xf32> to vector<1x128xf32>
    %cst_34 = arith.constant dense<0.000000e+00> : vector<8x128xf32>
    %48 = tpu.matmul %42, %45, %cst_34 {dimension_numbers = #tpu.dot_dimension_numbers<[1], [0], [0], [1], [0, 0, 1, 1], [], []>} : vector<8x32xf32>, vector<32x128xf32>, vector<8x128xf32> -> vector<8x128xf32>
    %49 = vector.broadcast %47 : vector<1x128xf32> to vector<8x128xf32>
    %50 = arith.addf %48, %49 : vector<8x128xf32>
    %c0_35 = arith.constant 0 : index
    %c0_36 = arith.constant 0 : index
    %c0_37 = arith.constant 0 : index
    %51 = vector.load %arg5[%c0_35, %c0_36, %c0_37] : memref<1x128x32xbf16, #tpu.memory_space<vmem>>, vector<1x128x32xbf16>
    %52 = vector.shape_cast %51 : vector<1x128x32xbf16> to vector<128x32xbf16>
    %53 = arith.extf %52 : vector<128x32xbf16> to vector<128x32xf32>
    %c0_38 = arith.constant 0 : index
    %c1_39 = arith.constant 1 : index
    %c0_40 = arith.constant 0 : index
    %54 = vector.load %arg6[%c0_38, %c1_39, %c0_40] : memref<1x8x128xf32, #tpu.memory_space<vmem>>, vector<1x1x32xf32>
    %55 = vector.shape_cast %54 : vector<1x1x32xf32> to vector<1x32xf32>
    %c0_41 = arith.constant 0 : index
    %c2 = arith.constant 2 : index
    %c0_42 = arith.constant 0 : index
    %56 = vector.load %arg6[%c0_41, %c2, %c0_42] : memref<1x8x128xf32, #tpu.memory_space<vmem>>, vector<1x1x128xf32>
    %57 = vector.shape_cast %56 : vector<1x1x128xf32> to vector<1x128xf32>
    %cst_43 = arith.constant 1.000000e+00 : f32
    %58 = vector.broadcast %cst_43 : f32 to vector<1x128xf32>
    %59 = arith.addf %57, %58 : vector<1x128xf32>
    %cst_44 = arith.constant 0.000000e+00 : f32
    %60 = vector.broadcast %cst_44 : f32 to vector<1x128xf32>
    %61 = arith.maximumf %59, %60 : vector<1x128xf32>
    %cst_45 = arith.constant dense<0.000000e+00> : vector<8x32xf32>
    %62 = tpu.matmul %50, %53, %cst_45 {dimension_numbers = #tpu.dot_dimension_numbers<[1], [0], [0], [1], [0, 0, 1, 1], [], []>} : vector<8x128xf32>, vector<128x32xf32>, vector<8x32xf32> -> vector<8x32xf32>
    %63 = vector.broadcast %55 : vector<1x32xf32> to vector<8x32xf32>
    %64 = arith.addf %62, %63 : vector<8x32xf32>
    %65 = arith.subf %42, %64 : vector<8x32xf32>
    %cst_46 = arith.constant 0.000000e+00 : f32
    %66 = vector.broadcast %cst_46 : f32 to vector<8x32xf32>
    %67 = arith.maximumf %65, %66 : vector<8x32xf32>
    %cst_47 = arith.constant dense<0.000000e+00> : vector<8x128xf32>
    %68 = tpu.matmul %67, %45, %cst_47 {dimension_numbers = #tpu.dot_dimension_numbers<[1], [0], [0], [1], [0, 0, 1, 1], [], []>} : vector<8x32xf32>, vector<32x128xf32>, vector<8x128xf32> -> vector<8x128xf32>
    %69 = vector.broadcast %47 : vector<1x128xf32> to vector<8x128xf32>
    %70 = arith.addf %68, %69 : vector<8x128xf32>
    %71 = vector.broadcast %61 : vector<1x128xf32> to vector<8x128xf32>
    %72 = arith.mulf %70, %71 : vector<8x128xf32>
    %73 = arith.addf %72, %50 : vector<8x128xf32>
    %cst_48 = arith.constant dense<0.000000e+00> : vector<8x32xf32>
    %74 = tpu.matmul %73, %53, %cst_48 {dimension_numbers = #tpu.dot_dimension_numbers<[1], [0], [0], [1], [0, 0, 1, 1], [], []>} : vector<8x128xf32>, vector<128x32xf32>, vector<8x32xf32> -> vector<8x32xf32>
    %75 = vector.broadcast %55 : vector<1x32xf32> to vector<8x32xf32>
    %76 = arith.addf %74, %75 : vector<8x32xf32>
    %77 = arith.subf %42, %76 : vector<8x32xf32>
    %cst_49 = arith.constant 0.000000e+00 : f32
    %78 = vector.broadcast %cst_49 : f32 to vector<8x32xf32>
    %79 = arith.maximumf %77, %78 : vector<8x32xf32>
    %cst_50 = arith.constant dense<0.000000e+00> : vector<8x128xf32>
    %80 = tpu.matmul %79, %45, %cst_50 {dimension_numbers = #tpu.dot_dimension_numbers<[1], [0], [0], [1], [0, 0, 1, 1], [], []>} : vector<8x32xf32>, vector<32x128xf32>, vector<8x128xf32> -> vector<8x128xf32>
    %81 = vector.broadcast %47 : vector<1x128xf32> to vector<8x128xf32>
    %82 = arith.addf %80, %81 : vector<8x128xf32>
    %83 = vector.broadcast %61 : vector<1x128xf32> to vector<8x128xf32>
    %84 = arith.mulf %82, %83 : vector<8x128xf32>
    %85 = arith.addf %84, %73 : vector<8x128xf32>
    %cst_51 = arith.constant dense<0.000000e+00> : vector<128xf32>
    %86 = vector.multi_reduction <add>, %85, %cst_51 [0] : vector<8x128xf32> to vector<128xf32>
    %87 = vector.shape_cast %86 : vector<128xf32> to vector<1x128xf32>
    %cst_52 = arith.constant 1.250000e-01 : f32
    %88 = vector.broadcast %cst_52 : f32 to vector<1x128xf32>
    %89 = arith.mulf %87, %88 : vector<1x128xf32>
    %90 = vector.broadcast %89 : vector<1x128xf32> to vector<8x128xf32>
    %91 = arith.subf %85, %90 : vector<8x128xf32>
    %92 = arith.mulf %91, %91 : vector<8x128xf32>
    %cst_53 = arith.constant dense<0.000000e+00> : vector<128xf32>
    %93 = vector.multi_reduction <add>, %92, %cst_53 [0] : vector<8x128xf32> to vector<128xf32>
    %94 = vector.shape_cast %93 : vector<128xf32> to vector<1x128xf32>
    %cst_54 = arith.constant 1.250000e-01 : f32
    %95 = vector.broadcast %cst_54 : f32 to vector<1x128xf32>
    %96 = arith.mulf %94, %95 : vector<1x128xf32>
    %cst_55 = arith.constant 9.99999974E-6 : f32
    %97 = vector.broadcast %cst_55 : f32 to vector<1x128xf32>
    %98 = arith.addf %96, %97 : vector<1x128xf32>
    %99 = math.rsqrt %98 : vector<1x128xf32>
    %100 = vector.broadcast %99 : vector<1x128xf32> to vector<8x128xf32>
    %101 = arith.mulf %91, %100 : vector<8x128xf32>
    %c0_56 = arith.constant 0 : index
    %c3 = arith.constant 3 : index
    %c0_57 = arith.constant 0 : index
    %102 = vector.load %arg6[%c0_56, %c3, %c0_57] : memref<1x8x128xf32, #tpu.memory_space<vmem>>, vector<1x1x128xf32>
    %103 = vector.shape_cast %102 : vector<1x1x128xf32> to vector<1x128xf32>
    %104 = vector.broadcast %103 : vector<1x128xf32> to vector<8x128xf32>
    %105 = arith.mulf %101, %104 : vector<8x128xf32>
    %c0_58 = arith.constant 0 : index
    %c4 = arith.constant 4 : index
    %c0_59 = arith.constant 0 : index
    %106 = vector.load %arg6[%c0_58, %c4, %c0_59] : memref<1x8x128xf32, #tpu.memory_space<vmem>>, vector<1x1x128xf32>
    %107 = vector.shape_cast %106 : vector<1x1x128xf32> to vector<1x128xf32>
    %108 = vector.broadcast %107 : vector<1x128xf32> to vector<8x128xf32>
    %109 = arith.addf %105, %108 : vector<8x128xf32>
    %cst_60 = arith.constant 0.000000e+00 : f32
    %110 = vector.broadcast %cst_60 : f32 to vector<8x128xf32>
    %111 = arith.maximumf %109, %110 : vector<8x128xf32>
    %c0_61 = arith.constant 0 : index
    %c0_62 = arith.constant 0 : index
    %c0_63 = arith.constant 0 : index
    %112 = vector.load %arg7[%c0_61, %c0_62, %c0_63] : memref<1x128x128xbf16, #tpu.memory_space<vmem>>, vector<1x128x128xbf16>
    %113 = vector.shape_cast %112 : vector<1x128x128xbf16> to vector<128x128xbf16>
    %114 = arith.extf %113 : vector<128x128xbf16> to vector<128x128xf32>
    %cst_64 = arith.constant dense<0.000000e+00> : vector<8x128xf32>
    %115 = tpu.matmul %111, %114, %cst_64 {dimension_numbers = #tpu.dot_dimension_numbers<[1], [0], [0], [1], [0, 0, 1, 1], [], []>} : vector<8x128xf32>, vector<128x128xf32>, vector<8x128xf32> -> vector<8x128xf32>
    %c0_65 = arith.constant 0 : index
    %c5 = arith.constant 5 : index
    %c0_66 = arith.constant 0 : index
    %116 = vector.load %arg6[%c0_65, %c5, %c0_66] : memref<1x8x128xf32, #tpu.memory_space<vmem>>, vector<1x1x128xf32>
    %117 = vector.shape_cast %116 : vector<1x1x128xf32> to vector<1x128xf32>
    %118 = vector.broadcast %117 : vector<1x128xf32> to vector<8x128xf32>
    %119 = arith.addf %115, %118 : vector<8x128xf32>
    %120 = arith.addf %109, %119 : vector<8x128xf32>
    %121 = tpu.iota {dimensions = array<i32: 1>} : vector<8x128xi32>
    %c42_i32 = arith.constant 42 : i32
    %122 = vector.broadcast %c42_i32 : i32 to vector<8x128xi32>
    %123 = arith.cmpi eq, %121, %122 : vector<8x128xi32>
    %124 = arith.negf %120 : vector<8x128xf32>
    %125 = math.exp %124 : vector<8x128xf32>
    %cst_67 = arith.constant 1.000000e+00 : f32
    %126 = vector.broadcast %cst_67 : f32 to vector<8x128xf32>
    %127 = arith.addf %126, %125 : vector<8x128xf32>
    %128 = arith.divf %126, %127 : vector<8x128xf32>
    %129 = arith.select %123, %128, %120 : vector<8x128xi1>, vector<8x128xf32>
    %c0_68 = arith.constant 0 : index
    %c0_69 = arith.constant 0 : index
    %c0_70 = arith.constant 0 : index
    %130 = vector.load %arg8[%c0_68, %c0_69, %c0_70] : memref<1x8x128xf32, #tpu.memory_space<vmem>>, vector<1x8x128xf32>
    %131 = vector.shape_cast %130 : vector<1x8x128xf32> to vector<8x128xf32>
    %132 = vector.shape_cast %129 : vector<8x128xf32> to vector<1x8x128xf32>
    tpu.vector_store %arg8[%c0_68, %c0_69, %c0_70], %132 {strides = array<i32>} : memref<1x8x128xf32, #tpu.memory_space<vmem>>, vector<1x8x128xf32>,
    return
  }
  func.func @transform_0(%arg0: i32) -> (i32, i32, i32, i32) {
    %c0_i32 = arith.constant 0 : i32
    %c0_i32_0 = arith.constant 0 : i32
    %c0_i32_1 = arith.constant 0 : i32
    %c0_i32_2 = arith.constant 0 : i32
    return %arg0, %c0_i32, %c0_i32_0, %c0_i32_1 : i32, i32, i32, i32
  }
  func.func @transform_1(%arg0: i32) -> (i32, i32, i32) {
    %c0_i32 = arith.constant 0 : i32
    %c0_i32_0 = arith.constant 0 : i32
    %c0_i32_1 = arith.constant 0 : i32
    return %arg0, %c0_i32, %c0_i32_0 : i32, i32, i32
  }
  func.func @transform_2(%arg0: i32) -> (i32, i32, i32, i32) {
    %c0_i32 = arith.constant 0 : i32
    %c0_i32_0 = arith.constant 0 : i32
    %c0_i32_1 = arith.constant 0 : i32
    %c0_i32_2 = arith.constant 0 : i32
    return %arg0, %c0_i32, %c0_i32_0, %c0_i32_1 : i32, i32, i32, i32
  }
  func.func @transform_3(%arg0: i32) -> (i32, i32, i32) {
    %c0_i32 = arith.constant 0 : i32
    %c0_i32_0 = arith.constant 0 : i32
    %c0_i32_1 = arith.constant 0 : i32
    return %arg0, %c0_i32, %c0_i32_0 : i32, i32, i32
  }
  func.func @transform_4(%arg0: i32) -> (i32, i32, i32) {
    %c0_i32 = arith.constant 0 : i32
    %c0_i32_0 = arith.constant 0 : i32
    %c0_i32_1 = arith.constant 0 : i32
    return %arg0, %c0_i32, %c0_i32_0 : i32, i32, i32
  }
  func.func @transform_5(%arg0: i32) -> (i32, i32, i32) {
    %c0_i32 = arith.constant 0 : i32
    %c0_i32_0 = arith.constant 0 : i32
    %c0_i32_1 = arith.constant 0 : i32
    return %arg0, %c0_i32, %c0_i32_0 : i32, i32, i32
  }
  func.func @transform_6(%arg0: i32) -> (i32, i32, i32) {
    %c0_i32 = arith.constant 0 : i32
    %c0_i32_0 = arith.constant 0 : i32
    %c0_i32_1 = arith.constant 0 : i32
    return %arg0, %c0_i32, %c0_i32_0 : i32, i32, i32
  }
  func.func @transform_7(%arg0: i32) -> (i32, i32, i32) {
    %c0_i32 = arith.constant 0 : i32
    %c0_i32_0 = arith.constant 0 : i32
    %c0_i32_1 = arith.constant 0 : i32
    return %arg0, %c0_i32, %c0_i32_0 : i32, i32, i32
  }
}

</mosaic_0001>

<bundles_post_ra>
// kernel: tpu_custom_call.1
= control target key start
LH: loop header
LB: loop body
LE: loop exit
PB: predicated region body
PF: predicated region fallthrough
CT: control target
= control target key end

     0   :  { %12 = vsyncpa [#allocation4], 0  ;;  %s2011_s0 = inlined_call_operand.hbm [shape: f32[3,8,16,64], index: 0, kind: input, shape index: {}]   ;;  %s2012_s1 = inlined_call_operand.vmem [shape: f32[3,8,16], index: 1, kind: input, shape index: {}]   ;;  %s2013_s2 = inlined_call_operand.vmem [shape: f32[3,2,16,1], index: 2, kind: input, shape index: {}]   ;;  %s2014_s3 = inlined_call_operand.vmem [shape: bf16[3,32,128], index: 3, kind: input, shape index: {}]   ;;  %s2015_s4 = inlined_call_operand.vmem [shape: bf16[3,128,32], index: 4, kind: input, shape index: {}]   ;;  %s2016_s5 = inlined_call_operand.vmem [shape: f32[3,8,128], index: 5, kind: input, shape index: {}]   ;;  %s2017_s6 = inlined_call_operand.vmem [shape: bf16[3,128,128], index: 6, kind: input, shape index: {}]   ;;  %s2018_s7 = inlined_call_operand.hbm [shape: f32[3,8,128], index: 7, kind: output, shape index: {}]  }
   0x1   :  { %14 = vsyncpa [#allocation4 + $0x1], 0 }
   0x2   :  { %15 = vsyncpa [#allocation5], 0 }
   0x3   :  { %17 = vsyncpa [#allocation5 + $0x1], 0  ;;  %s1581_s24 = smov 0   ;;  %s1583_s25 = smov 0  }
   0x4   :  { %s1585_s26 = smov 0   ;;  %s1587_s27 = smov 0  }
   0x5 LB: > { %s1602_s28 = sadd.s32 4294967295, %s1535_s27   ;;  %s1250_s29 = sadd.s32 4294967294, %s1535_s27   ;;  %s1535_s27 = sphi %s1587_s27, %s2029_s27   ;;  %s1531_s26 = sphi %s1585_s26, %s2028_s26   ;;  %s1527_s25 = sphi %s1583_s25, %s2027_s25   ;;  %s1523_s24 = sphi %s1581_s24, %s2026_s24  }
   0x6   : > { %s1606_s30 = sadd.s32 1, %s1535_s27   ;;  %s30_s8 = sadd.s32 1, %s1531_s26 }
   0x7   : > { %s27_s9 = ssub.s32 %s1535_s27, %s1606_s30  ;;  %p37_p0 = scmp.ne.s32.totalorder %s1531_s26, %s1527_s25 }
   0x8   : > { %p28_p1 = scmp.eq.s32.totalorder %s27_s9, 0  ;;  %p38_p2 = scmp.eq.s32.totalorder %s1535_s27, 0 }
   0x9   : > { %p43_p3 = scmp.ne.s32.totalorder %s1527_s25, %s1523_s24  ;;  %p44_p4 = scmp.eq.s32.totalorder %s1602_s28, 0 }
   0xa   : > { %s1618_s10 = scalar_select %p28_p1, %s1531_s26, %s30_s8  }
   0xb   : > { %p1620_p5 = por %p38_p2, %p37_p0  ;;  %p1624_p6 = por %p44_p4, %p43_p3 }
   0xc   : > { %2019 = sst [smem:[#allocation9_spill]] %s1618_s10  ;;  %p223_p7 = scmp.eq.s32.totalorder %s1602_s28, 2 }
   0xd   : > { %p229_p8 = scmp.eq.s32.totalorder %s1250_s29, 2  ;;  %p1383_p9 = scmp.lt.s32.totalorder %s1535_s27, 3 }
   0xe   : > { %p1630_p10 = por %p223_p7, %p37_p0  ;;  %s249_s15 = sand.u32 1, %s1531_s26  }
   0xf   : > { %p1634_p11 = por %p229_p8, %p43_p3  ;;  %s1279_s16 = sshll.u32 %s1535_s27, 7 }
  0x10   : > { %s1253_s17 = sshll.u32 %s249_s15, 7  ;;  %s258_s20 = scalar_lea.hbm %s2011_s0, %s1279_s16 }
  0x11   : > { %s259_s21 = sshll.u32 %s258_s20, 4  ;;  %s253_s22 = scalar_lea.vmem [#allocation3], %s1253_s17  ;;  %s260_s21 = int_to_ptr.hbm [resolvable:$true] %s259_s21 }
  0x12   : > { %s261_s23 = sshll.u32 %s253_s22, 4  ;;  %p1645_p12 = pnand %p1383_p9, %p1620_p5  ;;  %s262_s23 = int_to_ptr.vmem [resolvable:$true] %s261_s23 }
  0x13   : > { %p1256_p13 = scmp.ge.s32.totalorder %s1535_s27, 1  ;;  %p315_p0 = scmp.lt.s32.totalorder %s1535_s27, 4 }
  0x14   : > { %s250_s8 = scalar_lea.sflag [#allocation4], %s249_s15  ;;  %s1439_s9 = sshra.s32 %s260_s21, 4  ;;  %s1440_s9 = int_to_ptr.hbm [resolvable:$true] %s1439_s9 }
  0x15   : > { %s1441_s10 = scalar_lea.hbm %s1440_s9, 128  ;;  %p1443_p2 = pneg %p1645_p12 }
  0x16   : > { %p1442_p1 = scmp.ne.s32.totalorder %s1440_s9, %s1441_s10  ;;  %s1446_s11 = scalar_lea.hbm %s2011_s0, 384 }
  0x17   : > { %p1447_p5 = scmp.lt.s32.totalorder %s1440_s9, %s2011_s0  ;;  %p1448_p7 = scmp.lt.s32.totalorder %s1446_s11, %s1441_s10 }
  0x18   : > { %p1444_p3 = pnand %p1443_p2, %p1442_p1 }
  0x19   : > { %p1449_p8 = por %p1448_p7, %p1447_p5 }
  0x1a   : > { %p1445_p4 = pneg %p1444_p3 }
  0x1c   : > { %p1450_p9 = pnand %p1449_p8, %p1445_p4 }
  0x1e   : > { %1453 = shalt.err (!%p1450_p9)
}
  0x1f   : > { %s1537_s15 = smov 128   ;;  %s1538_s20 = smov 8  }
  0x20   : > { %1378 = dma.hbm_to_vmem [thread:$0]  (!%p1645_p12), %s260_s21, 2048, %s262_s23, %s250_s8, %s1537_s15, %s1537_s15, %s1538_s20  }
  0x21   : > { %p316_p1 = pnand %p1256_p13, %p315_p0 }
  0x22   : > { %s1666_s22 = sand.u32 (!%p316_p1), 1, %s1527_s25  }
  0x23   : > { %319 = sbr.rel (%p316_p1) target bundleno = 1456 (0x5b0), region = 48  ;;  %s1257_s10 = sshll.u32 (!%p316_p1), %s1666_s22, 7 }
  0x24   : > { %s322_s9 = scalar_lea.sflag (!%p316_p1), [#allocation4], %s1666_s22  ;;  %s1670_s16 = scalar_lea.vmem (!%p316_p1), [#allocation3], %s1257_s10 }
  0x28   : > { %1514 = dma.done.wait (%p1624_p6), %s322_s9, 2048  }
  0x29   : > { %1516 = vsyncadd (%p1624_p6), %s322_s9, 4294965248  ;;  %vm429_vm0 = vcmask 523264   ;;  %v1677_v0 = vld [vmem:[%s1670_s16 + $0x20] sm:$0xff]  ;;  %v1680_v1 = vld [vmem:[%s1670_s16 + $0x10] sm:$0xff]  ;;  %p385_p6 = scmp.lt.s32.totalorder %s1602_s28, 2  ;;  %s1540_s9 = smov 16  }
  0x2a   : > { %v1683_v2 = vld [vmem:[%s1670_s16] sm:$0xff]  ;;  %v442_v3 = vsel %vm429_vm0, %v1677_v0, 0.0  ;;  %v436_v4 = vsel %vm429_vm0, %v1680_v1, 0.0  ;;  %v1692_v6 = vld [vmem:[%s1670_s16 + $0x28] sm:$0xff]  ;;  %v1695_v7 = vld [vmem:[%s1670_s16 + $0x18] sm:$0xff]  ;;  %v480_v12 = vmul.f32 %v1680_v1, %v1680_v1  ;;  %v482_v26 = vmul.f32 %v1677_v0, %v1677_v0  ;;  %s1489_s20 = scalar_lea.hbm %s2018_s7, 24 }
  0x2b   : > { %v430_v5 = vsel %vm429_vm0, %v1683_v2, 0.0  ;;  %443 = vadd.xlane.f32.xlu2 %v442_v3  ;;  %437 = vadd.xlane.f32.xlu1 %v436_v4  ;;  %v1698_v8 = vld [vmem:[%s1670_s16 + $0x8] sm:$0xff]  ;;  %v445_v9 = vsel %vm429_vm0, %v1692_v6, 0.0  ;;  %v439_v10 = vsel %vm429_vm0, %v1695_v7, 0.0  ;;  %v478_v14 = vmul.f32 %v1683_v2, %v1683_v2  ;;  %v1716_v18 = vld [vmem:[%s1670_s16 + $0x38] sm:$0xff]  ;;  %v1719_v19 = vld [vmem:[%s1670_s16 + $0x30] sm:$0xff] }
  0x2c   : > { %431 = vadd.xlane.f32.xlu0 %v430_v5  ;;  %v433_v11 = vsel %vm429_vm0, %v1698_v8, 0.0  ;;  %v479_v13 = vmul.f32 %v1698_v8, %v1698_v8  ;;  %v500_v15 = vsel %vm429_vm0, %v480_v12, 0.0  ;;  %v481_v20 = vmul.f32 %v1695_v7, %v1695_v7  ;;  %v1731_v25 = vld [vmem:[%s1670_s16 + $0x40] sm:$0xff]  ;;  %v1744_v32 = vld [vmem:[%s1670_s16 + $0x48] sm:$0xff]  ;;  %v1753_v37 = vld [vmem:[%s1670_s16 + $0x58] sm:$0xff]  ;;  %s1806_s12 = scalar_select %p385_p6, %s1602_s28, 2 }
  0x2d   : > { %v494_v17 = vsel %vm429_vm0, %v478_v14, 0.0  ;;  %v451_v21 = vsel %vm429_vm0, %v1716_v18, 0.0  ;;  %v448_v22 = vsel %vm429_vm0, %v1719_v19, 0.0  ;;  %v483_v24 = vmul.f32 %v1692_v6, %v1692_v6  ;;  %v1756_v38 = vld [vmem:[%s1670_s16 + $0x50] sm:$0xff]  ;;  %v1764_v42 = vld [vmem:[%s1670_s16 + $0x68] sm:$0xff]  ;;  %v1767_v43 = vld [vmem:[%s1670_s16 + $0x60] sm:$0xff] }
  0x2e   : > { %v497_v16 = vsel %vm429_vm0, %v479_v13, 0.0  ;;  %v503_v23 = vsel %vm429_vm0, %v481_v20, 0.0  ;;  %v454_v27 = vsel %vm429_vm0, %v1731_v25, 0.0  ;;  %v506_v29 = vsel %vm429_vm0, %v482_v26, 0.0  ;;  %v1779_v49 = vld [vmem:[%s1670_s16 + $0x70] sm:$0xff]  ;;  %v1792_v56 = vld [vmem:[%s1670_s16 + $0x78] sm:$0xff] }
  0x2f   : > { %v509_v28 = vsel %vm429_vm0, %v483_v24, 0.0  ;;  %v485_v30 = vmul.f32 %v1716_v18, %v1716_v18  ;;  %v484_v31 = vmul.f32 %v1719_v19, %v1719_v19  ;;  %v457_v35 = vsel %vm429_vm0, %v1744_v32, 0.0  ;;  %s1280_s21 = sshll.u32 %s1806_s12, 5  ;;  %s1259_s17 = sshll.u32 %s1806_s12, 3 }
  0x30   : > { %v486_v36 = vmul.f32 %v1731_v25, %v1731_v25  ;;  %v463_v40 = vsel %vm429_vm0, %v1753_v37, 0.0  ;;  %v460_v41 = vsel %vm429_vm0, %v1756_v38, 0.0  ;;  %v487_v44 = vmul.f32 %v1744_v32, %v1744_v32  ;;  %s393_s8 = scalar_lea.vmem %s2013_s2, %s1280_s21  ;;  %s1818_s19 = scalar_lea.vmem %s2016_s5, %s1259_s17 }
  0x31   : > { %v515_v33 = vsel %vm429_vm0, %v485_v30, 0.0  ;;  %v512_v34 = vsel %vm429_vm0, %v484_v31, 0.0  ;;  %v469_v45 = vsel %vm429_vm0, %v1764_v42, 0.0  ;;  %v466_v46 = vsel %vm429_vm0, %v1767_v43, 0.0  ;;  %s388_s10 = scalar_lea.vmem %s2012_s1, %s1259_s17  ;;  %s1281_s16 = sshll.u32 %s1806_s12, 4 }
  0x32   : > { %v518_v39 = vsel %vm429_vm0, %v486_v36, 0.0  ;;  %v521_v47 = vsel %vm429_vm0, %v487_v44, 0.0  ;;  %v489_v48 = vmul.f32 %v1753_v37, %v1753_v37  ;;  %v488_v50 = vmul.f32 %v1756_v38, %v1756_v38  ;;  %s398_s29 = scalar_lea.vmem %s2014_s3, %s1281_s16 }
  0x33   : > { %446 = vadd.xlane.f32.xlu2 %v445_v9  ;;  %440 = vadd.xlane.f32.xlu1 %v439_v10  ;;  %v472_v51 = vsel %vm429_vm0, %v1779_v49, 0.0  ;;  %v491_v54 = vmul.f32 %v1764_v42, %v1764_v42  ;;  %v490_v55 = vmul.f32 %v1767_v43, %v1767_v43  ;;  %v475_v59 = vsel %vm429_vm0, %v1792_v56, 0.0 }
  0x34   : > { %434 = vadd.xlane.f32.xlu0 %v433_v11  ;;  %v527_v52 = vsel %vm429_vm0, %v489_v48, 0.0  ;;  %v524_v53 = vsel %vm429_vm0, %v488_v50, 0.0  ;;  %v493_v60 = vmul.f32 %v1792_v56, %v1792_v56  ;;  %v492_v61 = vmul.f32 %v1779_v49, %v1779_v49 }
  0x35   : > { %v533_v57 = vsel %vm429_vm0, %v491_v54, 0.0  ;;  %v530_v58 = vsel %vm429_vm0, %v490_v55, 0.0  ;;  %vm766_vm7 = vcmask 130112   ;;  %vm789_vm8 = vcmask 1041409  }
  0x36   : > { %v539_v62 = vsel %vm429_vm0, %v493_v60, 0.0  ;;  %v536_v63 = vsel %vm429_vm0, %v492_v61, 0.0  ;;  %vm791_vm9 = vcmask 1042434   ;;  %vm793_vm10 = vcmask 1043459  }
  0x37   : > { %vm795_vm11 = vcmask 1044484   ;;  %vm797_vm12 = vcmask 1045509   ;;  %vm799_vm13 = vcmask 1046534   ;;  %vm801_vm14 = vcmask 1047559  }
  0x38   : > { %vm804_vm15 = vcmask 130048  }
  0x3b   : > { %501 = vadd.xlane.f32.xlu2 %v500_v15  ;;  %498 = vadd.xlane.f32.xlu1 %v497_v16 }
  0x3c   : > { %495 = vadd.xlane.f32.xlu0 %v494_v17 }
  0x43   : > { %452 = vadd.xlane.f32.xlu2 %v451_v21  ;;  %449 = vadd.xlane.f32.xlu1 %v448_v22 }
  0x44   : > { %504 = vadd.xlane.f32.xlu0 %v503_v23 }
  0x4b   : > { %455 = vadd.xlane.f32.xlu2 %v454_v27  ;;  %510 = vadd.xlane.f32.xlu1 %v509_v28 }
  0x4c   : > { %507 = vadd.xlane.f32.xlu0 %v506_v29 }
  0x53   : > { %516 = vadd.xlane.f32.xlu2 %v515_v33  ;;  %513 = vadd.xlane.f32.xlu1 %v512_v34 }
  0x54   : > { %458 = vadd.xlane.f32.xlu0 %v457_v35 }
  0x5b   : > { %519 = vadd.xlane.f32.xlu2 %v518_v39  ;;  %464 = vadd.xlane.f32.xlu1 %v463_v40 }
  0x5c   : > { %461 = vadd.xlane.f32.xlu0 %v460_v41 }
  0x63   : > { %470 = vadd.xlane.f32.xlu2 %v469_v45  ;;  %467 = vadd.xlane.f32.xlu1 %v466_v46 }
  0x64   : > { %522 = vadd.xlane.f32.xlu0 %v521_v47 }
  0x6b   : > { %473 = vadd.xlane.f32.xlu2 %v472_v51  ;;  %528 = vadd.xlane.f32.xlu1 %v527_v52 }
  0x6c   : > { %525 = vadd.xlane.f32.xlu0 %v524_v53 }
  0x73   : > { %534 = vadd.xlane.f32.xlu2 %v533_v57  ;;  %531 = vadd.xlane.f32.xlu1 %v530_v58  ;;  %v1539_v58 = vmov 0  }
  0x74   : > { %476 = vadd.xlane.f32.xlu0 %v475_v59  ;;  %1421 = vset.pattern.permute.xlu2 %v1539_v58 }
  0x75   : > { %1422 = vset.pattern.permute.xlu0 %v1539_v58  ;;  %1423 = vset.pattern.permute.xlu1 %v1539_v58 }
  0x7b   : > { %540 = vadd.xlane.f32.xlu1 %v539_v62 }
  0x7c   : > { %537 = vadd.xlane.f32.xlu0 %v536_v63 }
  0x9e   : > { %v444_v3 = vpop.xlane.xlu2 %443  ;;  %v438_v4 = vpop.xlane.xlu1 %437 }
  0x9f   : > { %v432_v5 = vpop.xlane.xlu0 %431 }
  0xa0   : > { %v542_v9 = vadd.f32 %v438_v4, %v432_v5 }
  0xa2   : > { %v543_v41 = vadd.f32 %v542_v9, %v444_v3 }
  0xa6   : > { %v447_v10 = vpop.xlane.xlu2 %446  ;;  %v441_v11 = vpop.xlane.xlu1 %440 }
  0xa7   : > { %v435_v12 = vpop.xlane.xlu0 %434 }
  0xa8   : > { %v549_v35 = vadd.f32 %v441_v11, %v435_v12 }
  0xaa   : > { %v550_v39 = vadd.f32 %v549_v35, %v447_v10 }
  0xae   : > { %v502_v13 = vpop.xlane.xlu2 %501  ;;  %v499_v14 = vpop.xlane.xlu1 %498 }
  0xaf   : > { %v496_v15 = vpop.xlane.xlu0 %495 }
  0xb0   : > { %v558_v50 = vadd.f32 %v502_v13, %v496_v15 }
  0xb6   : > { %v453_v16 = vpop.xlane.xlu2 %452  ;;  %v450_v17 = vpop.xlane.xlu1 %449 }
  0xb7   : > { %v505_v20 = vpop.xlane.xlu0 %504  ;;  %v551_v45 = vadd.f32 %v550_v39, %v453_v16  ;;  %v544_v46 = vadd.f32 %v543_v41, %v450_v17 }
  0xb8   : > { %v565_v47 = vadd.f32 %v505_v20, %v499_v14 }
  0xbe   : > { %v456_v21 = vpop.xlane.xlu2 %455  ;;  %v511_v22 = vpop.xlane.xlu1 %510 }
  0xbf   : > { %v508_v23 = vpop.xlane.xlu0 %507  ;;  %v545_v51 = vadd.f32 %v544_v46, %v456_v21  ;;  %v566_v52 = vadd.f32 %v565_v47, %v511_v22 }
  0xc0   : > { %v559_v54 = vadd.f32 %v558_v50, %v508_v23  ;;  %v581_v50 = vld [vmem:[%s393_s8 + $0x8] sm:$0xff] }
  0xc6   : > { %v517_v24 = vpop.xlane.xlu2 %516  ;;  %v514_v26 = vpop.xlane.xlu1 %513 }
  0xc7   : > { %v459_v27 = vpop.xlane.xlu0 %458  ;;  %v567_v59 = vadd.f32 %v566_v52, %v517_v24  ;;  %v560_v62 = vadd.f32 %v559_v54, %v514_v26  ;;  %v580_v52 = vld [vmem:[%s393_s8] sm:$0xff] }
  0xc8   : > { %v552_v48 = vadd.f32 %v551_v45, %v459_v27 }
  0xce   : > { %v520_v28 = vpop.xlane.xlu2 %519  ;;  %v465_v29 = vpop.xlane.xlu1 %464 }
  0xcf   : > { %v462_v30 = vpop.xlane.xlu0 %461  ;;  %v553_v53 = vadd.f32 %v552_v48, %v465_v29  ;;  %v561_v5 = vadd.f32 %v560_v62, %v520_v28 }
  0xd0   : > { %v546_v55 = vadd.f32 %v545_v51, %v462_v30 }
  0xd6   : > { %v471_v31 = vpop.xlane.xlu2 %470  ;;  %v468_v33 = vpop.xlane.xlu1 %467 }
  0xd7   : > { %v523_v34 = vpop.xlane.xlu0 %522  ;;  %v554_v60 = vadd.f32 %v553_v53, %v471_v31  ;;  %v547_v63 = vadd.f32 %v546_v55, %v468_v33 }
  0xd8   : > { %v568_v3 = vadd.f32 %v567_v59, %v523_v34  ;;  %v1269_v59 = vld [vmem:[%s393_s8 + $0x10] sm:$0xff] }
  0xde   : > { %v529_v36 = vpop.xlane.xlu1 %528  ;;  %v474_v44 = vpop.xlane.xlu2 %473 }
  0xdf   : > { %v526_v40 = vpop.xlane.xlu0 %525  ;;  %v548_v9 = vadd.f32 %v547_v63, %v474_v44  ;;  %v569_v11 = vadd.f32 %v568_v3, %v529_v36  ;;  %v1270_v63 = vld [vmem:[%s393_s8 + $0x18] sm:$0xff]  ;;  %s1282_s8 = sshll.u32 %s1806_s12, 6  ;;  %s1258_s12 = sshll.u32 %s1666_s22, 3 }
  0xe0   : > { %v562_v12 = vadd.f32 %v561_v5, %v526_v40  ;;  %s1899_s18 = scalar_lea.vmem %s2015_s4, %s1282_s8 }
  0xe1   : > { %v556_v15 = vmul.f32 0.001953125, %v548_v9 }
  0xe3   : > { %v574_v26 = vmul.f32 %v556_v15, %v556_v15 }
  0xe6   : > { %v532_v57 = vpop.xlane.xlu1 %531  ;;  %v535_v10 = vpop.xlane.xlu2 %534 }
  0xe7   : > { %v477_v61 = vpop.xlane.xlu0 %476  ;;  %v570_v13 = vadd.f32 %v569_v11, %v535_v10  ;;  %v563_v16 = vadd.f32 %v562_v12, %v532_v57 }
  0xe8   : > { %v555_v4 = vadd.f32 %v554_v60, %v477_v61 }
  0xea   : > { %v557_v14 = vmul.f32 0.001953125, %v555_v4 }
  0xec   : > { %v575_v23 = vmul.f32 %v557_v14, %v557_v14 }
  0xee   : > { %v541_v17 = vpop.xlane.xlu1 %540 }
  0xef   : > { %v571_v20 = vadd.f32 %v570_v13, %v541_v17  ;;  %v538_v21 = vpop.xlane.xlu0 %537 }
  0xf0   : > { %v564_v22 = vadd.f32 %v563_v16, %v538_v21 }
  0xf1   : > { %v573_v24 = vmul.f32 0.001953125, %v571_v20 }
  0xf2   : > { %v572_v27 = vmul.f32 0.001953125, %v564_v22 }
  0xf3   : > { %v577_v29 = vsub.f32 %v573_v24, %v575_v23 }
  0xf4   : > { %v576_v28 = vsub.f32 %v572_v27, %v574_v26 }
  0xf5   : > { %v579_v30 = vmax.f32 %v577_v29, 0.0 }
  0xf6   : > { %v578_v31 = vmax.f32 %v576_v28, 0.0 }
  0xf7   : > { %v586_v33 = vadd.f32 1e-05, %v579_v30 }
  0xf8   : > { %v585_v34 = vadd.f32 1e-05, %v578_v31 }
  0xf9   : > { %1429 = vrsqrt.f32 %v586_v33  ;;  %vm603_vm3 = vweird.f32 %v586_v33 }
  0xfa   : > { %1431 = vrsqrt.f32 %v585_v34  ;;  %vm593_vm5 = vweird.f32 %v585_v34 }
  0xff   : > { %v1430_v35 = vpop.eup %1429 }
 0x100   : > { %v1432_v36 = vpop.eup %1431  ;;  %v598_v39 = vmul.f32 %v1430_v35, %v586_v33  ;;  %vm604_vm1 = vweird.f32 %v1430_v35 }
 0x101   : > { %v588_v40 = vmul.f32 %v1432_v36, %v585_v34  ;;  %vm594_vm2 = vweird.f32 %v1432_v36  ;;  %vm605_vm4 = vmor %vm603_vm3, %vm604_vm1  ;;  %vm824_vm1 = vcmask 261120  }
 0x102   : > { %v599_v41 = vmul.f32 %v1430_v35, %v598_v39  ;;  %vm595_vm6 = vmor %vm593_vm5, %vm594_vm2 }
 0x103   : > { %v589_v44 = vmul.f32 %v1432_v36, %v588_v40 }
 0x104   : > { %v600_v45 = vmul.f32 0.5, %v599_v41 }
 0x105   : > { %v590_v46 = vmul.f32 0.5, %v589_v44 }
 0x106   : > { %v601_v47 = vsub.f32 1.5, %v600_v45 }
 0x107   : > { %v591_v48 = vsub.f32 1.5, %v590_v46 }
 0x108   : > { %v602_v51 = vmul.f32 %v1430_v35, %v601_v47 }
 0x109   : > { %v592_v53 = vmul.f32 %v1432_v36, %v591_v48 }
 0x10a   : > { %v606_v54 = vsel %vm605_vm4, %v1430_v35, %v602_v51 }
 0x10b   : > { %v608_v55 = vmul.f32 %v606_v54, %v581_v50  ;;  %v596_v57 = vsel %vm595_vm6, %v1432_v36, %v592_v53 }
 0x10c   : > { %v607_v58 = vmul.f32 %v596_v57, %v580_v52 }
 0x10d   : > { %620 = vperm.xlu0 %1422, %v608_v55   ;;  %v610_v62 = vmul.f32 %v608_v55, %v557_v14 }
 0x10e   : > { %615 = vperm.xlu2 %1421, %v607_v58   ;;  %v609_v60 = vmul.f32 %v607_v58, %v556_v15 }
 0x10f   : > { %v612_v3 = vsub.f32 %v1270_v63, %v610_v62 }
 0x110   : > { %v611_v61 = vsub.f32 %v1269_v59, %v609_v60 }
 0x112   : > { %641 = vperm.xlu1 %1423, %v611_v61  }
 0x116   : > { %646 = vperm.xlu2 %1421, %v612_v3  }
 0x168   : > { %v616_v4 = vpop.permute.xlu2 %615 }
 0x169   : > { %v625_v12 = vmul.f32 %v616_v4, %v1680_v1  ;;  %v623_v13 = vmul.f32 %v616_v4, %v1683_v2  ;;  %v627_v16 = vmul.f32 %v616_v4, %v1677_v0  ;;  %v631_v26 = vmul.f32 %v616_v4, %v1731_v25 }
 0x16a   : > { %v637_v47 = vmul.f32 %v616_v4, %v1779_v49  ;;  %v635_v53 = vmul.f32 %v616_v4, %v1767_v43  ;;  %v633_v49 = vmul.f32 %v616_v4, %v1756_v38 }
 0x170   : > { %v1824_v10 = vpop.permute.xlu2 %646 }
 0x17f   : > { %v1820_v5 = vpop.permute.xlu0 %620 }
 0x180   : > { %v624_v9 = vmul.f32 %v1820_v5, %v1698_v8  ;;  %v626_v21 = vmul.f32 %v1820_v5, %v1695_v7  ;;  %v629_v7 = vmul.f32 %v616_v4, %v1719_v19  ;;  %v634_v31 = vmul.f32 %v1820_v5, %v1753_v37 }
 0x181   : > { %v628_v25 = vmul.f32 %v1820_v5, %v1692_v6  ;;  %v632_v37 = vmul.f32 %v1820_v5, %v1744_v32  ;;  %v630_v44 = vmul.f32 %v1820_v5, %v1716_v18  ;;  %v638_v43 = vmul.f32 %v1820_v5, %v1792_v56 }
 0x182   : > { %v650_v11 = vadd.f32 %v1824_v10, %v624_v9  ;;  %v652_v0 = vadd.f32 %v1824_v10, %v626_v21  ;;  %v660_v39 = vadd.f32 %v1824_v10, %v634_v31  ;;  %v636_v63 = vmul.f32 %v1820_v5, %v1764_v42  ;;  %v806_v42 = vld [vmem:[%s388_s10] sm:$0xff]  ;;  %s1964_s10 = scalar_lea.vmem %s2017_s6, %s1282_s8 }
 0x183   : > { %v654_v19 = vadd.f32 %v1824_v10, %v628_v25  ;;  %v658_v46 = vadd.f32 %v1824_v10, %v632_v37  ;;  %v656_v52 = vadd.f32 %v1824_v10, %v630_v44  ;;  %v664_v38 = vadd.f32 %v1824_v10, %v638_v43 }
 0x184   : > { %v642_v14 = vpop.permute.xlu1 %641  ;;  %v666_v15 = vmax.f32 %v650_v11, 0.0  ;;  %v668_v30 = vmax.f32 %v652_v0, 0.0  ;;  %v676_v41 = vmax.f32 %v660_v39, 0.0  ;;  %v662_v9 = vadd.f32 %v1824_v10, %v636_v63 }
 0x185   : > { %v651_v17 = vadd.f32 %v642_v14, %v625_v12  ;;  %v649_v20 = vadd.f32 %v642_v14, %v623_v13  ;;  %v653_v8 = vadd.f32 %v642_v14, %v627_v16  ;;  %v657_v27 = vadd.f32 %v642_v14, %v631_v26 }
 0x186   : > { %v684_v22 = vsel %vm429_vm0, %v666_v15, 0.0  ;;  %v655_v34 = vadd.f32 %v642_v14, %v629_v7  ;;  %v690_v36 = vsel %vm429_vm0, %v668_v30, 0.0  ;;  %v670_v6 = vmax.f32 %v654_v19, 0.0  ;;  %v1362_v7 = vld [vmem:[%s1899_s18 + $0x30] sm:$0xff]   ;;  %v1361_v19 = vld [vmem:[%s1899_s18 + $0x28] sm:$0xff]  }
 0x187   : > { %685 = vadd.xlane.f32.xlu1 %v684_v22  ;;  %v667_v23 = vmax.f32 %v651_v17, 0.0  ;;  %v665_v24 = vmax.f32 %v649_v20, 0.0  ;;  %v669_v29 = vmax.f32 %v653_v8, 0.0  ;;  %v673_v28 = vmax.f32 %v657_v27, 0.0  ;;  %v1356_v22 = vld [vmem:[%s398_s29 + $0x8] sm:$0xff]   ;;  %v1285_v8 = vld [vmem:[%s398_s29] sm:$0xff]  }
 0x188   : > { %v671_v40 = vmax.f32 %v655_v34, 0.0  ;;  %v714_v48 = vsel %vm429_vm0, %v676_v41, 0.0  ;;  %v696_v50 = vsel %vm429_vm0, %v670_v6, 0.0  ;;  %v663_v51 = vadd.f32 %v642_v14, %v637_v47 }
 0x189   : > { %v687_v1 = vsel %vm429_vm0, %v667_v23, 0.0  ;;  %v681_v2 = vsel %vm429_vm0, %v665_v24, 0.0  ;;  %v693_v33 = vsel %vm429_vm0, %v669_v29, 0.0  ;;  %v705_v35 = vsel %vm429_vm0, %v673_v28, 0.0  ;;  %v1363_v29 = vld [vmem:[%s1899_s18 + $0x38] sm:$0xff]  }
 0x18a   : > { %688 = vadd.xlane.f32.xlu0 %v687_v1  ;;  %682 = vadd.xlane.f32.xlu2 %v681_v2  ;;  %v699_v45 = vsel %vm429_vm0, %v671_v40, 0.0  ;;  %v674_v32 = vmax.f32 %v658_v46, 0.0  ;;  %v679_v18 = vmax.f32 %v663_v51, 0.0  ;;  %v672_v54 = vmax.f32 %v656_v52, 0.0 }
 0x18b   : > { %v661_v57 = vadd.f32 %v642_v14, %v635_v53  ;;  %v659_v60 = vadd.f32 %v642_v14, %v633_v49  ;;  %v680_v11 = vmax.f32 %v664_v38, 0.0  ;;  %v678_v12 = vmax.f32 %v662_v9, 0.0  ;;  %v1359_v9 = vld [vmem:[%s1899_s18 + $0x18] sm:$0xff]  }
 0x18c   : > { %v708_v55 = vsel %vm429_vm0, %v674_v32, 0.0  ;;  %v723_v58 = vsel %vm429_vm0, %v679_v18, 0.0  ;;  %v702_v59 = vsel %vm429_vm0, %v672_v54, 0.0  ;;  %v1883_v23 = vunpack.c.h.bf16 %v1356_v22  ;;  %v1360_v32 = vld [vmem:[%s1899_s18 + $0x20] sm:$0xff]  }
 0x18d   : > { %v677_v61 = vmax.f32 %v661_v57, 0.0  ;;  %v675_v62 = vmax.f32 %v659_v60, 0.0  ;;  %v726_v13 = vsel %vm429_vm0, %v680_v11, 0.0  ;;  %v720_v56 = vsel %vm429_vm0, %v678_v12, 0.0 }
 0x18e   : > { %v1885_v24 = vunpack.c.l.bf16 %v1356_v22  ;;  %840 = vmatpush.msra.mxu0 %v1883_v23  ;;  %v1889_v26 = vunpack.c.h.bf16 %v1285_v8  ;;  %v761_v2 = vlaneseq  ;;  %v1892_v27 = vunpack.c.l.bf16 %v1285_v8 }
 0x18f   : > { %694 = vadd.xlane.f32.xlu1 %v693_v33  ;;  %v717_v3 = vsel %vm429_vm0, %v677_v61, 0.0  ;;  %v711_v4 = vsel %vm429_vm0, %v675_v62, 0.0  ;;  %v1323_v30 = vunpack.c.h.bf16 %v1363_v29  ;;  %v1322_v31 = vunpack.c.l.bf16 %v1363_v29 }
 0x190   : > { %841 = vmatpush.msra.mxu0 %v1885_v24  ;;  %v1904_v28 = vand.u32 127, %v761_v2  ;;  %v1319_v34 = vunpack.c.h.bf16 %v1362_v7  ;;  %v1318_v6 = vunpack.c.l.bf16 %v1362_v7  ;;  %v1311_v43 = vunpack.c.h.bf16 %v1360_v32 }
 0x191   : > { %885 = vmatpush.msra.mxu1 %v1323_v30  ;;  %933 = vmatpush.msra.mxu3 %v1323_v30  ;;  %v1306_v29 = vunpack.c.l.bf16 %v1359_v9  ;;  %vm811_vm0 = vcmask 261248  }
 0x192   : > { %706 = vadd.xlane.f32.xlu0 %v705_v35  ;;  %691 = vadd.xlane.f32.xlu2 %v690_v36  ;;  %v1911_v40 = vadd.s32 4294967288, %v1904_v28 }
 0x193   : > { %842 = vmatpush.msra.mxu0 %v1889_v26  ;;  %886 = vmatpush.msra.mxu1 %v1322_v31 }
 0x194   : > { %934 = vmatpush.msra.mxu3 %v1322_v31 }
 0x195   : > { %843 = vmatpush.msra.mxu0 %v1892_v27  ;;  %887 = vmatpush.msra.mxu1 %v1319_v34 }
 0x196   : > { %935 = vmatpush.msra.mxu3 %v1319_v34 }
 0x197   : > { %700 = vadd.xlane.f32.xlu1 %v699_v45  ;;  %922 = vmatpush.msrb.mxu0 %v1883_v23 }
 0x198   : > { %888 = vmatpush.msra.mxu1 %v1318_v6  ;;  %936 = vmatpush.msra.mxu3 %v1318_v6 }
 0x199   : > { %923 = vmatpush.msrb.mxu0 %v1885_v24 }
 0x19a   : > { %715 = vadd.xlane.f32.xlu0 %v714_v48  ;;  %697 = vadd.xlane.f32.xlu2 %v696_v50  ;;  %v1315_v50 = vunpack.c.h.bf16 %v1361_v19 }
 0x19b   : > { %924 = vmatpush.msrb.mxu0 %v1889_v26 }
 0x19c   : > { %889 = vmatpush.msra.mxu1 %v1315_v50  ;;  %937 = vmatpush.msra.mxu3 %v1315_v50 }
 0x19d   : > { %925 = vmatpush.msrb.mxu0 %v1892_v27 }
 0x19f   : > { %709 = vadd.xlane.f32.xlu1 %v708_v55  ;;  %v1314_v55 = vunpack.c.l.bf16 %v1361_v19 }
 0x1a1   : > { %890 = vmatpush.msra.mxu1 %v1314_v55  ;;  %938 = vmatpush.msra.mxu3 %v1314_v55 }
 0x1a2   : > { %724 = vadd.xlane.f32.xlu0 %v723_v58  ;;  %703 = vadd.xlane.f32.xlu2 %v702_v59 }
 0x1a3   : > { %891 = vmatpush.msra.mxu1 %v1311_v43  ;;  %939 = vmatpush.msra.mxu3 %v1311_v43 }
 0x1a7   : > { %718 = vadd.xlane.f32.xlu1 %v717_v3 }
 0x1aa   : > { %712 = vadd.xlane.f32.xlu2 %v711_v4 }
 0x1af   : > { %727 = vadd.xlane.f32.xlu1 %v726_v13 }
 0x1b2   : > { %721 = vadd.xlane.f32.xlu2 %v720_v56  ;;  %v1310_v56 = vunpack.c.l.bf16 %v1360_v32 }
 0x1b4   : > { %892 = vmatpush.msra.mxu1 %v1310_v56  ;;  %940 = vmatpush.msra.mxu3 %v1310_v56 }
 0x1ca   : > { %808 = vrot.lane.b32.xlu2 %v806_v42, %s1540_s9  ;;  %s1276_s9 = sshll.u32 %s1602_s28, 3  ;;  %s1093_s28 = scalar_lea.sflag [#allocation5], %s1666_s22 }
 0x1cb   : > { %s1103_s23 = scalar_lea.hbm %s2018_s7, %s1276_s9 }
 0x1cc   : > { %s1107_s8 = sshll.u32 %s1103_s23, 4  ;;  %s1108_s8 = int_to_ptr.hbm [resolvable:$true] %s1107_s8 }
 0x1cd   : > { %s1483_s17 = sshra.s32 %s1108_s8, 4  ;;  %s1484_s17 = int_to_ptr.hbm [resolvable:$true] %s1483_s17 }
 0x1ce   : > { %s1485_s11 = scalar_lea.hbm %s1484_s17, 8  ;;  %p1490_p2 = scmp.lt.s32.totalorder %s1484_s17, %s2018_s7 }
 0x1cf   : > { %p1486_p12 = scmp.ne.s32.totalorder %s1484_s17, %s1485_s11  ;;  %p1491_p3 = scmp.lt.s32.totalorder %s1489_s20, %s1485_s11 }
 0x1d1   : > { %p1487_p13 = pnand %p1486_p12, %p1630_p10  ;;  %p1492_p4 = por %p1491_p3, %p1490_p2 }
 0x1d3   : > { %p1488_p0 = pneg %p1487_p13 }
 0x1d5   : > { %p1493_p5 = pnand %p1492_p4, %p1488_p0 }
 0x1fa   : > { %v686_v5 = vpop.xlane.xlu1 %685 }
 0x1fb   : > { %v730_v44 = vmul.f32 0.015625, %v686_v5 }
 0x1fd   : > { %v683_v10 = vpop.xlane.xlu2 %682  ;;  %v689_v15 = vpop.xlane.xlu0 %688  ;;  %v765_v57 = vperm.slane %v730_v44, %v1911_v40 }
 0x1fe   : > { %v729_v35 = vmul.f32 0.015625, %v683_v10  ;;  %v731_v37 = vmul.f32 0.015625, %v689_v15 }
 0x200   : > { %v763_v51 = vperm.slane %v729_v35, %v1904_v28  ;;  %v768_v53 = vperm.slane %v731_v37, %v1904_v28 }
 0x202   : > { %v695_v14 = vpop.xlane.xlu1 %694  ;;  %v767_v62 = vsel %vm766_vm7, %v765_v57, %v763_v51  ;;  %v1424_v51 = vld [vmem:[%s1818_s19] ss:$0 sm:$0xff] }
 0x203   : > { %v733_v45 = vmul.f32 0.015625, %v695_v14 }
 0x205   : > { %v692_v16 = vpop.xlane.xlu2 %691  ;;  %v1881_v21 = vpop.xlane.xlu0 %706  ;;  %v771_v49 = vperm.slane %v733_v45, %v1904_v28 }
 0x206   : > { %v732_v33 = vmul.f32 0.015625, %v692_v16  ;;  %v737_v63 = vmul.f32 0.015625, %v1881_v21 }
 0x208   : > { %v769_v46 = vperm.slane %v732_v33, %v1911_v40  ;;  %v777_v21 = vperm.slane %v737_v63, %v1904_v28 }
 0x20a   : > { %v701_v17 = vpop.xlane.xlu1 %700  ;;  %v770_v59 = vsel %vm766_vm7, %v769_v46, %v768_v53  ;;  %v1425_v53 = vld [vmem:[%s1818_s19 + $0x1] ss:$0 sm:$0xff] }
 0x20b   : > { %v735_v47 = vmul.f32 0.015625, %v701_v17  ;;  %v790_v42 = vsel %vm789_vm8, %v770_v59, %v767_v62 }
 0x20d   : > { %v698_v20 = vpop.xlane.xlu2 %697  ;;  %v716_v25 = vpop.xlane.xlu0 %715  ;;  %v774_v60 = vperm.slane %v735_v47, %v1904_v28  ;;  %v1293_v47 = vld [vmem:[%s1899_s18] sm:$0xff]  }
 0x20e   : > { %v734_v36 = vmul.f32 0.015625, %v698_v20  ;;  %v740_v61 = vmul.f32 0.015625, %v716_v25  ;;  %v1307_v20 = vunpack.c.h.bf16 %v1359_v9  ;;  %v1294_v50 = vunpack.c.l.bf16 %v1293_v47  ;;  %v1370_v9 = vld [vmem:[%s1964_s10 + $0x38] sm:$0xff]  }
 0x210   : > { %v772_v52 = vperm.slane %v734_v36, %v1911_v40  ;;  %v781_v15 = vperm.slane %v740_v61, %v1911_v40  ;;  %893 = vmatpush.msra.mxu1 %v1307_v20  ;;  %941 = vmatpush.msra.mxu3 %v1307_v20  ;;  %v1367_v20 = vld [vmem:[%s1964_s10 + $0x20] sm:$0xff]  }
 0x212   : > { %v710_v1 = vpop.xlane.xlu1 %709  ;;  %v773_v3 = vsel %vm766_vm7, %v772_v52, %v771_v49  ;;  %894 = vmatpush.msra.mxu1 %v1306_v29  ;;  %942 = vmatpush.msra.mxu3 %v1306_v29 }
 0x213   : > { %v738_v58 = vmul.f32 0.015625, %v710_v1  ;;  %v792_v14 = vsel %vm791_vm9, %v773_v3, %v790_v42  ;;  %v1358_v1 = vld [vmem:[%s1899_s18 + $0x10] sm:$0xff]  }
 0x214   : > { %v1303_v34 = vunpack.c.h.bf16 %v1358_v1 }
 0x215   : > { %v704_v0 = vpop.xlane.xlu2 %703  ;;  %v725_v38 = vpop.xlane.xlu0 %724  ;;  %v778_v5 = vperm.slane %v738_v58, %v1911_v40 }
 0x216   : > { %v736_v41 = vmul.f32 0.015625, %v704_v0  ;;  %v743_v16 = vmul.f32 0.015625, %v725_v38  ;;  %895 = vmatpush.msra.mxu1 %v1303_v34  ;;  %943 = vmatpush.msra.mxu3 %v1303_v34 }
 0x217   : > { %v779_v7 = vsel %vm766_vm7, %v778_v5, %v777_v21 }
 0x218   : > { %v775_v18 = vperm.slane %v736_v41, %v1911_v40  ;;  %v786_v25 = vperm.slane %v743_v16, %v1904_v28  ;;  %v1302_v41 = vunpack.c.l.bf16 %v1358_v1 }
 0x21a   : > { %v719_v39 = vpop.xlane.xlu1 %718  ;;  %v776_v11 = vsel %vm766_vm7, %v775_v18, %v774_v60  ;;  %896 = vmatpush.msra.mxu1 %v1302_v41  ;;  %944 = vmatpush.msra.mxu3 %v1302_v41 }
 0x21b   : > { %v741_v10 = vmul.f32 0.015625, %v719_v39  ;;  %v794_v22 = vsel %vm793_vm10, %v776_v11, %v792_v14  ;;  %v1357_v39 = vld [vmem:[%s1899_s18 + $0x8] sm:$0xff]   ;;  %v1369_v11 = vld [vmem:[%s1964_s10 + $0x30] sm:$0xff]  }
 0x21c   : > { %v796_v33 = vsel %vm795_vm11, %v779_v7, %v794_v22  ;;  %v1299_v44 = vunpack.c.h.bf16 %v1357_v39  ;;  %v1298_v45 = vunpack.c.l.bf16 %v1357_v39  ;;  %v1351_v42 = vunpack.c.h.bf16 %v1369_v11 }
 0x21d   : > { %v713_v48 = vpop.xlane.xlu2 %712  ;;  %v783_v30 = vperm.slane %v741_v10, %v1904_v28  ;;  %v1368_v10 = vld [vmem:[%s1964_s10 + $0x28] sm:$0xff]   ;;  %v1350_v14 = vunpack.c.l.bf16 %v1369_v11 }
 0x21e   : > { %v739_v54 = vmul.f32 0.015625, %v713_v48  ;;  %897 = vmatpush.msra.mxu1 %v1299_v44  ;;  %945 = vmatpush.msra.mxu3 %v1299_v44  ;;  %v1295_v48 = vunpack.c.h.bf16 %v1293_v47  ;;  %v1347_v16 = vunpack.c.h.bf16 %v1368_v10  ;;  %v1346_v21 = vunpack.c.l.bf16 %v1368_v10 }
 0x220   : > { %v780_v12 = vperm.slane %v739_v54, %v1904_v28  ;;  %898 = vmatpush.msra.mxu1 %v1298_v45  ;;  %946 = vmatpush.msra.mxu3 %v1298_v45 }
 0x222   : > { %v728_v4 = vpop.xlane.xlu1 %727  ;;  %v782_v2 = vsel %vm766_vm7, %v781_v15, %v780_v12  ;;  %899 = vmatpush.msra.mxu1 %v1295_v48  ;;  %947 = vmatpush.msra.mxu3 %v1295_v48  ;;  %v1355_v12 = vunpack.c.h.bf16 %v1370_v9 }
 0x223   : > { %v744_v13 = vmul.f32 0.015625, %v728_v4  ;;  %v798_v35 = vsel %vm797_vm12, %v782_v2, %v796_v33  ;;  %v1366_v2 = vld [vmem:[%s1964_s10 + $0x18] sm:$0xff]  }
 0x224   : > { %900 = vmatpush.msra.mxu1 %v1294_v50  ;;  %948 = vmatpush.msra.mxu3 %v1294_v50  ;;  %v1339_v7 = vunpack.c.h.bf16 %v1366_v2 }
 0x225   : > { %v722_v17 = vpop.xlane.xlu2 %721  ;;  %v787_v0 = vperm.slane %v744_v13, %v1911_v40  ;;  %v1354_v13 = vunpack.c.l.bf16 %v1370_v9  ;;  %1049 = vmatpush.msra.mxu2 %v1355_v12 }
 0x226   : > { %v742_v8 = vmul.f32 0.015625, %v722_v17 }
 0x227   : > { %v788_v19 = vsel %vm766_vm7, %v787_v0, %v786_v25  ;;  %1050 = vmatpush.msra.mxu2 %v1354_v13  ;;  %v1342_v0 = vunpack.c.l.bf16 %v1367_v20  ;;  %v1338_v25 = vunpack.c.l.bf16 %v1366_v2 }
 0x228   : > { %v784_v31 = vperm.slane %v742_v8, %v1911_v40  ;;  %v1343_v8 = vunpack.c.h.bf16 %v1367_v20 }
 0x229   : > { %1051 = vmatpush.msra.mxu2 %v1351_v42 }
 0x22a   : > { %v785_v36 = vsel %vm766_vm7, %v784_v31, %v783_v30  ;;  %v1365_v31 = vld [vmem:[%s1964_s10 + $0x10] sm:$0xff]   ;;  %vm1070_vm7 = vcmp.eq.s32.totalorder %v1904_v28, 42 }
 0x22b   : > { %v800_v37 = vsel %vm799_vm13, %v785_v36, %v798_v35  ;;  %1052 = vmatpush.msra.mxu2 %v1350_v14  ;;  %v1335_v34 = vunpack.c.h.bf16 %v1365_v31  ;;  %v1364_v36 = vld [vmem:[%s1964_s10 + $0x8] sm:$0xff]   ;;  %v1334_v39 = vunpack.c.l.bf16 %v1365_v31 }
 0x22c   : > { %v802_v40 = vsel %vm801_vm14, %v788_v19, %v800_v37  ;;  %v1331_v37 = vunpack.c.h.bf16 %v1364_v36 }
 0x22d   : > { %v809_v6 = vpop.permute.xlu2 %808  ;;  %805 = vst.msk [vmem:[#allocation2] sm:$0xff] %vm804_vm15, %v802_v40  ;;  %1053 = vmatpush.msra.mxu2 %v1347_v16  ;;  %v1325_v40 = vld [vmem:[%s1964_s10] sm:$0xff]  }
 0x22e   : > { %812 = vst.msk [vmem:[#allocation2] sm:$0xff] %vm811_vm0, %v809_v6  ;;  %v1330_v6 = vunpack.c.l.bf16 %v1364_v36  ;;  %v1327_v45 = vunpack.c.h.bf16 %v1325_v40  ;;  %v1326_v47 = vunpack.c.l.bf16 %v1325_v40 }
 0x22f   : > { %1054 = vmatpush.msra.mxu2 %v1346_v21 }
 0x231   : > { %1055 = vmatpush.msra.mxu2 %v1343_v8 }
 0x233   : > { %1056 = vmatpush.msra.mxu2 %v1342_v0 }
 0x235   : > { %v813_v46 = vld [vmem:[#allocation2] sm:$0xff]  ;;  %1057 = vmatpush.msra.mxu2 %v1339_v7 }
 0x236   : > { %1271 = vmatmul.msk.f32.vlgmr.msra.gmra.mxu0 %vm824_vm1, %v813_v46 }
 0x237   : > { %970 = vmatpush.msra.mxu0 %v1883_v23  ;;  %1058 = vmatpush.msra.mxu2 %v1338_v25 }
 0x239   : > { %971 = vmatpush.msra.mxu0 %v1885_v24  ;;  %1059 = vmatpush.msra.mxu2 %v1335_v34 }
 0x23b   : > { %972 = vmatpush.msra.mxu0 %v1889_v26  ;;  %v881_v26 = vld [vmem:[%s1818_s19 + $0x2] sm:$0x1]  ;;  %1060 = vmatpush.msra.mxu2 %v1334_v39 }
 0x23d   : > { %973 = vmatpush.msra.mxu0 %v1892_v27  ;;  %v882_v27 = vadd.f32 1.0, %v881_v26  ;;  %1061 = vmatpush.msra.mxu2 %v1331_v37  ;;  %v1426_v26 = vld [vmem:[%s1818_s19 + $0x3] ss:$0 sm:$0xff] }
 0x23f   : > { %v883_v55 = vmax.f32 %v882_v27, 0.0  ;;  %1062 = vmatpush.msra.mxu2 %v1330_v6 }
 0x241   : > { %v930_v57 = vperm.slane %v883_v55, 0  ;;  %1063 = vmatpush.msra.mxu2 %v1327_v45 }
 0x243   : > { %1064 = vmatpush.msra.mxu2 %v1326_v47 }
 0x2b3   : > { %v845_v52 = vpop.f32.mrf.mxu0 }
 0x2b4   : > { %v846_v32 = vadd.f32 %v1424_v51, %v845_v52 }
 0x2b6   : > { %901 = vmatmul.f32.vlgmr.msra.gmra.mxu1 %v846_v32 }
 0x333   : > { %v902_v23 = vpop.f32.mrf.mxu1 }
 0x334   : > { %v903_v18 = vadd.f32 %v1425_v53, %v902_v23 }
 0x336   : > { %v905_v24 = vsub.f32 %v813_v46, %v903_v18 }
 0x338   : > { %v906_v54 = vmax.f32 %v905_v24, 0.0 }
 0x33a   : > { %1272 = vmatmul.msk.f32.vlgmr.msrb.gmra.mxu0 %vm824_vm1, %v906_v54 }
 0x3b7   : > { %v927_v49 = vpop.f32.mrf.mxu0 }
 0x3b8   : > { %v928_v58 = vadd.f32 %v1424_v51, %v927_v49 }
 0x3ba   : > { %v931_v59 = vmul.f32 %v930_v57, %v928_v58 }
 0x3bc   : > { %v932_v60 = vadd.f32 %v931_v59, %v846_v32 }
 0x3be   : > { %949 = vmatmul.f32.vlgmr.msra.gmra.mxu3 %v932_v60 }
 0x441   : > { %v950_v61 = vpop.f32.mrf.mxu3 }
 0x442   : > { %v951_v43 = vadd.f32 %v1425_v53, %v950_v61 }
 0x444   : > { %v953_v62 = vsub.f32 %v813_v46, %v951_v43 }
 0x446   : > { %v954_v63 = vmax.f32 %v953_v62, 0.0 }
 0x448   : > { %1273 = vmatmul.msk.f32.vlgmr.msra.gmra.mxu0 %vm824_vm1, %v954_v63 }
 0x4c5   : > { %v975_v3 = vpop.f32.mrf.mxu0 }
 0x4c6   : > { %v976_v38 = vadd.f32 %v1424_v51, %v975_v3 }
 0x4c8   : > { %v978_v4 = vmul.f32 %v976_v38, %v930_v57  ;;  %v1427_v57 = vld [vmem:[%s1818_s19 + $0x4] ss:$0 sm:$0xff] }
 0x4ca   : > { %v979_v56 = vadd.f32 %v978_v4, %v932_v60  ;;  %v1428_v60 = vld [vmem:[%s1818_s19 + $0x5] ss:$0 sm:$0xff]  ;;  %s384_s19 = scalar_lea.vmem [#allocation6], %s1258_s12 }
 0x4cb   : > { %s1105_s29 = sshll.u32 %s384_s19, 4  ;;  %s1106_s29 = int_to_ptr.vmem [resolvable:$true] %s1105_s29 }
 0x4cc   : > { %v980_v5 = vrot.slane %v979_v56, 4 }
 0x4ce   : > { %v981_v15 = vadd.f32 %v980_v5, %v979_v56 }
 0x4d0   : > { %v982_v17 = vrot.slane %v981_v15, 2 }
 0x4d2   : > { %v983_v22 = vadd.f32 %v982_v17, %v981_v15 }
 0x4d4   : > { %v984_v1 = vrot.slane %v983_v22, 1 }
 0x4d6   : > { %v985_v29 = vadd.f32 %v984_v1, %v983_v22 }
 0x4d8   : > { %v986_v30 = vmul.f32 0.125, %v985_v29 }
 0x4da   : > { %v987_v33 = vsub.f32 %v979_v56, %v986_v30 }
 0x4dc   : > { %v988_v35 = vmul.f32 %v987_v33, %v987_v33 }
 0x4de   : > { %v989_v19 = vrot.slane %v988_v35, 4 }
 0x4e0   : > { %v990_v41 = vadd.f32 %v989_v19, %v988_v35 }
 0x4e2   : > { %v991_v44 = vrot.slane %v990_v41, 2 }
 0x4e4   : > { %v992_v46 = vadd.f32 %v991_v44, %v990_v41 }
 0x4e6   : > { %v993_v48 = vrot.slane %v992_v46, 1 }
 0x4e8   : > { %v994_v50 = vadd.f32 %v993_v48, %v992_v46 }
 0x4ea   : > { %v995_v51 = vmul.f32 0.125, %v994_v50 }
 0x4ec   : > { %v996_v52 = vadd.f32 1e-05, %v995_v51 }
 0x4ee   : > { %1433 = vrsqrt.f32 %v996_v52  ;;  %vm1003_vm3 = vweird.f32 %v996_v52 }
 0x4f4   : > { %v1434_v32 = vpop.eup %1433 }
 0x4f5   : > { %v998_v53 = vmul.f32 %v1434_v32, %v996_v52  ;;  %vm1004_vm2 = vweird.f32 %v1434_v32 }
 0x4f6   : > { %vm1005_vm4 = vmor %vm1003_vm3, %vm1004_vm2 }
 0x4f7   : > { %v999_v23 = vmul.f32 %v1434_v32, %v998_v53 }
 0x4f9   : > { %v1000_v18 = vmul.f32 0.5, %v999_v23 }
 0x4fb   : > { %v1001_v24 = vsub.f32 1.5, %v1000_v18 }
 0x4fd   : > { %v1002_v54 = vmul.f32 %v1434_v32, %v1001_v24 }
 0x4ff   : > { %v1006_v27 = vsel %vm1005_vm4, %v1434_v32, %v1002_v54 }
 0x500   : > { %v1007_v55 = vmul.f32 %v1006_v27, %v987_v33 }
 0x502   : > { %v1010_v49 = vmul.f32 %v1426_v26, %v1007_v55 }
 0x504   : > { %v1013_v58 = vadd.f32 %v1427_v57, %v1010_v49 }
 0x506   : > { %v1014_v59 = vmax.f32 %v1013_v58, 0.0 }
 0x508   : > { %1065 = vmatmul.f32.vlgmr.msra.gmra.mxu2 %v1014_v59 }
 0x58b   : > { %v1066_v61 = vpop.f32.mrf.mxu2 }
 0x58c   : > { %v1067_v43 = vadd.f32 %v1428_v60, %v1066_v61 }
 0x58e   : > { %v1069_v62 = vadd.f32 %v1067_v43, %v1013_v58 }
 0x590   : > { %v1274_v63 = vmul.f32 -1.442695, %v1069_v62 }
 0x592   : > { %1435 = vpow2.f32 %v1274_v63 }
 0x598   : > { %v1436_v3 = vpop.eup %1435 }
 0x599   : > { %v1074_v38 = vadd.f32 1.0, %v1436_v3 }
 0x59b   : > { %1437 = vrcp.f32 %v1074_v38  ;;  %v1086_v12 = vand.u32 2147483648, %v1074_v38  ;;  %v1084_v56 = vand.u32 2147483647, %v1074_v38  ;;  %vm1080_vm6 = vweird.f32 %v1074_v38 }
 0x59d   : > { %v1087_v5 = vor.u32 1.1754944e-38, %v1086_v12  ;;  %vm1085_vm9 = vcmp.eq.f32.partialorder %v1084_v56, 8.507059e+37 }
 0x5a1   : > { %v1438_v4 = vpop.eup %1437 }
 0x5a2   : > { %v1076_v9 = vmul.f32 %v1438_v4, %v1074_v38  ;;  %vm1081_vm5 = vweird.f32 %v1438_v4 }
 0x5a3   : > { %vm1082_vm8 = vmor %vm1080_vm6, %vm1081_vm5 }
 0x5a4   : > { %v1077_v11 = vsub.f32 1.0, %v1076_v9 }
 0x5a6   : > { %v1078_v13 = vmul.f32 %v1438_v4, %v1077_v11 }
 0x5a8   : > { %v1079_v42 = vadd.f32 %v1438_v4, %v1078_v13 }
 0x5aa   : > { %v1083_v10 = vsel %vm1082_vm8, %v1438_v4, %v1079_v42 }
 0x5ab   : > { %v1088_v14 = vsel %vm1085_vm9, %v1087_v5, %v1083_v10 }
 0x5ac   : > { %v1090_v15 = vsel %vm1070_vm7, %v1088_v14, %v1069_v62 }
 0x5ad   : > { %1091 = vst [vmem:[%s384_s19] sm:$0xff] %v1090_v15 }
 0x5ae   : > { %1496 = shalt.err (!%p1493_p5)
}
 0x5af   : > { %1373 = dma.vmem_to_hbm [thread:$0]  (%p1630_p10), %s1106_s29, 128, %s1108_s8, %s1093_s28  }
 0x5b0 PF: > { %p1384_p7 = scmp.ge.s32.totalorder %s1535_s27, 2  ;;  %s1119_s22 = sand.u32 1, %s1523_s24  }
 0x5b1   : > { %s1120_s9 = scalar_lea.sflag [#allocation5], %s1119_s22 }
 0x5b2   : > { %p1380_p8 = pnand %p1384_p7, %p1634_p11 }
 0x5b4   : > { %p1381_p9 = pneg %p1380_p8 }
 0x5b6   : > { %1518 = dma.done.wait (%p1381_p9), %s1120_s9, 128  }
 0x5b7   : > { %1520 = vsyncadd (%p1381_p9), %s1120_s9, 4294967168  ;;  %s2025_s16 = sld [smem:[#allocation9_spill]]  ;;  %p20_p1 = scmp.ge.s32.totalorder %s1606_s30, 5  }
 0x5b8   : > { %s2026_s24 = smov %s1527_s25  ;;  %s2027_s25 = smov %s1531_s26 }
 0x5b9   : > { %s2029_s27 = smov %s1606_s30  ;;  %22 = sbr.rel (!%p20_p1) target bundleno = 5 (0x5), region = 112 }
 0x5bd   : > { %s2028_s26 = smov %s2025_s16 }
 0x5be   :  { %1126 = vsyncpa [#allocation4], 1 }
 0x5bf   :  { %1128 = vsyncpa [#allocation4 + $0x1], 1 }
 0x5c0   :  { %1129 = vsyncpa [#allocation5], 1 }
 0x5c1   :  { %1131 = vsyncpa [#allocation5 + $0x1], 1 }

</bundles_post_ra>
